<compile_context>
chip_gen: v7x
topology: tpu7x:2x2x1
jax: 0.10.0
libtpu: 0.0.40
codegen_flags: <defaults>
</compile_context>

<pallas_src>
import functools
import math

import jax
import jax.numpy as jnp
from jax.experimental import pallas as pl
from jax.experimental.pallas import tpu as pltpu


# ----------------------------- Pallas kernel -------------------------------


def _seq2seq_kernel(x_ref, wg_ref, bg_ref, wl_ref, bl_ref, out_ref, *,
                    num_layers, hidden, embed, seq_len, batch):
    H, E, B, T, L = hidden, embed, batch, seq_len, num_layers

    # Hoist only the small biases (do NOT pin the gate weights in vregs across
    # the unrolled loop; vld slots are far from saturated so per-use loads are
    # effectively free and keep register pressure / spill risk down).
    bias = [bg_ref[l] for l in range(L)]                        # (1, 4H) f32 each
    b_lin = bl_ref[...]                                         # (1, V)  f32

    # cuDNN-style split: layer-0 input->gate contribution for every timestep
    # in one up-front MXU contraction (removes T matmuls from the serial
    # recurrence chain); layer-0 bias folded in once here.
    gx0 = (jnp.dot(x_ref[...], wg_ref[0, :E, :],
                   preferred_element_type=jnp.float32)
           + bias[0])                                           # (T*B, 4H) f32

    hs = [jnp.zeros((B, H), jnp.float32) for _ in range(L)]
    cs = [jnp.zeros((B, H), jnp.float32) for _ in range(L)]

    inp = None
    for t in range(T):            # static loops: every slice/store offset is a
        for l in range(L):        # compile-time constant (no dynamic updates)
            h_b = hs[l].astype(jnp.bfloat16)
            g_h = jnp.dot(h_b, wg_ref[l, E:, :],
                          preferred_element_type=jnp.float32)   # (B, 4H)
            if l == 0:
                gates = gx0[t * B:(t + 1) * B, :] + g_h
            else:
                g_x = jnp.dot(inp, wg_ref[l, :E, :],
                              preferred_element_type=jnp.float32)
                gates = g_x + g_h + bias[l]
            # PyTorch gate order i, f, g, o.  (The four sub-128-lane gate
            # extractions could be further reduced with a pltpu.roll packed
            # layout; kept straightforward for robustness.)
            i_g = jax.nn.sigmoid(gates[:, 0 * H:1 * H])
            f_g = jax.nn.sigmoid(gates[:, 1 * H:2 * H])
            g_g = jnp.tanh(gates[:, 2 * H:3 * H])
            o_g = jax.nn.sigmoid(gates[:, 3 * H:4 * H])
            c_new = f_g * cs[l] + i_g * g_g
            h_new = o_g * jnp.tanh(c_new)
            cs[l] = c_new
            hs[l] = h_new
            inp = h_new.astype(jnp.bfloat16)
        # Immediate per-step vocab projection + static-slice store: no
        # loop-carried hidden slab, and the MXU work overlaps the recurrence.
        out_ref[t * B:(t + 1) * B, :] = (
            jnp.dot(inp, wl_ref[...], preferred_element_type=jnp.float32)
            + b_lin)


@functools.partial(jax.jit, static_argnames=("num_layers", "hidden"))
def seq2seq_forward(features, src_tokens, params, *, num_layers, hidden):
    """Encoder forward, mode='factual' (eval, teacher_forcing_ratio=1.0,
    full-length sequences): returns Linear(LSTM hiddens), shape ((L+1)*B, V)."""
    H = hidden
    # Embedding gather + feature prepend fuse with the pallas_call under jit;
    # only a dense 2-D (T*B, E) bf16 slab goes through HBM.
    emb = params["embed"][src_tokens.T]                        # (L_src, B, E)
    x = jnp.concatenate([features[None, :, :], emb], axis=0)   # (T, B, E)
    T, B, E = x.shape
    x = x.reshape(T * B, E).astype(jnp.bfloat16)               # (T*B, E) bf16
    V = params["w_lin_t"].shape[1]

    kernel = functools.partial(_seq2seq_kernel, num_layers=num_layers,
                               hidden=H, embed=E, seq_len=T, batch=B)
    grid_spec = pltpu.PrefetchScalarGridSpec(
        num_scalar_prefetch=0,
        grid=(1,),        # tiny problem: fully VMEM-resident, one grid step
        in_specs=[
            pl.BlockSpec((T * B, E), lambda i: (0, 0)),
            pl.BlockSpec((num_layers, E + H, 4 * H), lambda i: (0, 0, 0)),
            pl.BlockSpec((num_layers, 1, 4 * H), lambda i: (0, 0, 0)),
            pl.BlockSpec((H, V), lambda i: (0, 0)),
            pl.BlockSpec((1, V), lambda i: (0, 0)),
        ],
        out_specs=pl.BlockSpec((T * B, V), lambda i: (0, 0)),
    )
    # Note: at B=2 there is nothing to split across v7x's two TensorCores; if
    # batch grows, add a leading "parallel" batch grid axis (recurrence is
    # independent per batch row).
    return pl.pallas_call(
        kernel,
        out_shape=jax.ShapeDtypeStruct((T * B, V), jnp.float32),
        grid_spec=grid_spec,
        compiler_params=pltpu.CompilerParams(
            dimension_semantics=("arbitrary",)),   # sequential recurrence
    )(x, params["w_gates"], params["bias"], params["w_lin_t"], params["b_lin"])


# --------------------------- pure-JAX reference ----------------------------


def reference_forward(features, src_tokens, params, *, num_layers, hidden):
    H = hidden
    emb = params["embed"][src_tokens.T]
    x = jnp.concatenate([features[None, :, :], emb],
                        axis=0).astype(jnp.bfloat16)           # (T, B, E)
    T, B, _ = x.shape
    hs = [jnp.zeros((B, H), jnp.float32) for _ in range(num_layers)]
    cs = [jnp.zeros((B, H), jnp.float32) for _ in range(num_layers)]
    collected = []
    for t in range(T):
        inp = x[t]
        for l in range(num_layers):
            xh = jnp.concatenate([inp, hs[l].astype(jnp.bfloat16)], axis=-1)
            gates = (jnp.dot(xh, params["w_gates"][l],
                             preferred_element_type=jnp.float32)
                     + params["bias"][l])
            i_g = jax.nn.sigmoid(gates[:, 0 * H:1 * H])
            f_g = jax.nn.sigmoid(gates[:, 1 * H:2 * H])
            g_g = jnp.tanh(gates[:, 2 * H:3 * H])
            o_g = jax.nn.sigmoid(gates[:, 3 * H:4 * H])
            cs[l] = f_g * cs[l] + i_g * g_g
            hs[l] = o_g * jnp.tanh(cs[l])
            inp = hs[l].astype(jnp.bfloat16)
        collected.append(hs[-1])
    hid = jnp.concatenate(collected, axis=0)                   # (T*B, H)
    return (jnp.dot(hid.astype(jnp.bfloat16), params["w_lin_t"],
                    preferred_element_type=jnp.float32) + params["b_lin"])


# --------------------------------- params -----------------------------------


def init_params(key, vocab, embed, hidden, num_layers):
    assert embed == hidden, "stacked LSTM weights assume embed_size == hidden"
    H = hidden
    k = 1.0 / math.sqrt(H)
    keys = jax.random.split(key, 7)
    embed_tbl = 0.1 * jax.random.normal(keys[0], (vocab, embed), jnp.float32)
    # PyTorch LSTM weights: W_ih (4H, in), W_hh (4H, H), b_ih (4H,), b_hh (4H,)
    wih = jax.random.uniform(keys[1], (num_layers, 4 * H, embed),
                             jnp.float32, -k, k)
    whh = jax.random.uniform(keys[2], (num_layers, 4 * H, H),
                             jnp.float32, -k, k)
    b_ih = jax.random.uniform(keys[3], (num_layers, 4 * H), jnp.float32, -k, k)
    b_hh = jax.random.uniform(keys[4], (num_layers, 4 * H), jnp.float32, -k, k)
    w_lin = jax.random.uniform(keys[5], (vocab, H), jnp.float32, -k, k)
    b_lin = jax.random.uniform(keys[6], (vocab,), jnp.float32, -k, k)
    wih_t = jnp.transpose(wih, (0, 2, 1))                      # (L, E, 4H)
    whh_t = jnp.transpose(whh, (0, 2, 1))                      # (L, H, 4H)
    # Stacked gate weight: rows [:E] are W_ih, rows [E:] are W_hh (the kernel
    # slices them statically and issues two dots, no lane concat of [x, h]).
    w_gates = jnp.concatenate([wih_t, whh_t], axis=1).astype(jnp.bfloat16)
    return {
        "embed": embed_tbl,                                    # (V, E)  f32
        "w_gates": w_gates,                                    # (L, E+H, 4H) bf16
        "bias": (b_ih + b_hh)[:, None, :],                     # (L, 1, 4H)  f32
        "w_lin_t": jnp.transpose(w_lin).astype(jnp.bfloat16),  # (H, V) bf16
        "b_lin": b_lin[None, :],                               # (1, V) f32
    }


# --------------------------------- main -------------------------------------


if __name__ == "__main__":
    embed_size = 32
    hidden_size = 32
    vocab_size = 128
    num_layers = 2
    B = 2
    L = 8       # src_tokens length; LSTM runs T = L + 1 steps (features first)

    root = jax.random.PRNGKey(0)
    kp, kf, kt = jax.random.split(root, 3)
    params = init_params(kp, vocab_size, embed_size, hidden_size, num_layers)

    features = jax.random.normal(kf, (B, embed_size), jnp.float32)
    src_tokens = jax.random.randint(kt, (B, L), 0, vocab_size, jnp.int32)

    out = seq2seq_forward(features, src_tokens, params,
                          num_layers=num_layers, hidden=hidden_size)
    out = jax.block_until_ready(out)

    ref = reference_forward(features, src_tokens, params,
                            num_layers=num_layers, hidden=hidden_size)
    ref = jax.block_until_ready(ref)

    assert out.shape == ((L + 1) * B, vocab_size), out.shape
    max_err = float(jnp.max(jnp.abs(out - ref)))
    assert jnp.allclose(out, ref, atol=5e-3, rtol=5e-3), max_err
    print("KERNEL_OK")
</pallas_src>

<mosaic_0001>
module attributes {stable_mosaic.version = 11 : i64} {
  func.func @_seq2seq_kernel(%arg0: i32, %arg1: memref<18x32xbf16, #tpu.memory_space<vmem>>, %arg2: memref<2x64x128xbf16, #tpu.memory_space<vmem>>, %arg3: memref<2x1x128xf32, #tpu.memory_space<vmem>>, %arg4: memref<32x128xbf16, #tpu.memory_space<vmem>>, %arg5: memref<1x128xf32, #tpu.memory_space<vmem>>, %arg6: memref<18x128xf32, #tpu.memory_space<vmem>>) attributes {dimension_semantics = [#tpu.dimension_semantics<arbitrary>], iteration_bounds = array<i64: 1>, scalar_prefetch = 0 : i64, scratch_operands = 0 : i64, tpu.core_type = #tpu.core_type<tc>, window_params = [{pipeline_mode = #tpu.pipeline_mode<synchronous>, transform_indices = @transform_0, window_bounds = array<i64: 18, 32>}, {pipeline_mode = #tpu.pipeline_mode<synchronous>, transform_indices = @transform_1, window_bounds = array<i64: 2, 64, 128>}, {pipeline_mode = #tpu.pipeline_mode<synchronous>, transform_indices = @transform_2, window_bounds = array<i64: 2, 1, 128>}, {pipeline_mode = #tpu.pipeline_mode<synchronous>, transform_indices = @transform_3, window_bounds = array<i64: 32, 128>}, {pipeline_mode = #tpu.pipeline_mode<synchronous>, transform_indices = @transform_4, window_bounds = array<i64: 1, 128>}, {pipeline_mode = #tpu.pipeline_mode<synchronous>, transform_indices = @transform_5, window_bounds = array<i64: 18, 128>}]} {
    %c0 = arith.constant 0 : index
    %c0_0 = arith.constant 0 : index
    %c0_1 = arith.constant 0 : index
    %0 = vector.load %arg3[%c0, %c0_0, %c0_1] : memref<2x1x128xf32, #tpu.memory_space<vmem>>, vector<1x1x128xf32>
    %1 = vector.shape_cast %0 : vector<1x1x128xf32> to vector<1x128xf32>
    %c1 = arith.constant 1 : index
    %c0_2 = arith.constant 0 : index
    %c0_3 = arith.constant 0 : index
    %2 = vector.load %arg3[%c1, %c0_2, %c0_3] : memref<2x1x128xf32, #tpu.memory_space<vmem>>, vector<1x1x128xf32>
    %3 = vector.shape_cast %2 : vector<1x1x128xf32> to vector<1x128xf32>
    %c0_4 = arith.constant 0 : index
    %c0_5 = arith.constant 0 : index
    %4 = vector.load %arg5[%c0_4, %c0_5] : memref<1x128xf32, #tpu.memory_space<vmem>>, vector<1x128xf32>
    %c0_6 = arith.constant 0 : index
    %c0_7 = arith.constant 0 : index
    %5 = vector.load %arg1[%c0_6, %c0_7] : memref<18x32xbf16, #tpu.memory_space<vmem>>, vector<18x32xbf16>
    %c0_8 = arith.constant 0 : index
    %c0_9 = arith.constant 0 : index
    %c0_10 = arith.constant 0 : index
    %6 = vector.load %arg2[%c0_8, %c0_9, %c0_10] : memref<2x64x128xbf16, #tpu.memory_space<vmem>>, vector<1x32x128xbf16>
    %7 = vector.shape_cast %6 : vector<1x32x128xbf16> to vector<32x128xbf16>
    %cst = arith.constant dense<0.000000e+00> : vector<18x128xf32>
    %8 = tpu.matmul %5, %7, %cst {dimension_numbers = #tpu.dot_dimension_numbers<[1], [0], [0], [1], [0, 0, 1, 1], [], []>} : vector<18x32xbf16>, vector<32x128xbf16>, vector<18x128xf32> -> vector<18x128xf32>
    %9 = vector.broadcast %1 : vector<1x128xf32> to vector<18x128xf32>
    %10 = arith.addf %8, %9 : vector<18x128xf32>
    %cst_11 = arith.constant 0.000000e+00 : f32
    %11 = vector.broadcast %cst_11 : f32 to vector<2x32xf32>
    %cst_12 = arith.constant 0.000000e+00 : f32
    %12 = vector.broadcast %cst_12 : f32 to vector<2x32xf32>
    %cst_13 = arith.constant 0.000000e+00 : f32
    %13 = vector.broadcast %cst_13 : f32 to vector<2x32xf32>
    %cst_14 = arith.constant 0.000000e+00 : f32
    %14 = vector.broadcast %cst_14 : f32 to vector<2x32xf32>
    %15 = arith.truncf %11 : vector<2x32xf32> to vector<2x32xbf16>
    %c0_15 = arith.constant 0 : index
    %c32 = arith.constant 32 : index
    %c0_16 = arith.constant 0 : index
    %16 = vector.load %arg2[%c0_15, %c32, %c0_16] : memref<2x64x128xbf16, #tpu.memory_space<vmem>>, vector<1x32x128xbf16>
    %17 = vector.shape_cast %16 : vector<1x32x128xbf16> to vector<32x128xbf16>
    %cst_17 = arith.constant dense<0.000000e+00> : vector<2x128xf32>
    %18 = tpu.matmul %15, %17, %cst_17 {dimension_numbers = #tpu.dot_dimension_numbers<[1], [0], [0], [1], [0, 0, 1, 1], [], []>} : vector<2x32xbf16>, vector<32x128xbf16>, vector<2x128xf32> -> vector<2x128xf32>
    %19 = vector.extract_strided_slice %10 {offsets = [0, 0], sizes = [2, 128], strides = [1, 1]} : vector<18x128xf32> to vector<2x128xf32>
    %20 = arith.addf %19, %18 : vector<2x128xf32>
    %21 = vector.extract_strided_slice %20 {offsets = [0, 0], sizes = [2, 32], strides = [1, 1]} : vector<2x128xf32> to vector<2x32xf32>
    %22 = arith.negf %21 : vector<2x32xf32>
    %23 = math.exp %22 : vector<2x32xf32>
    %cst_18 = arith.constant 1.000000e+00 : f32
    %24 = vector.broadcast %cst_18 : f32 to vector<2x32xf32>
    %25 = arith.addf %24, %23 : vector<2x32xf32>
    %26 = arith.divf %24, %25 : vector<2x32xf32>
    %27 = vector.extract_strided_slice %20 {offsets = [0, 32], sizes = [2, 32], strides = [1, 1]} : vector<2x128xf32> to vector<2x32xf32>
    %28 = arith.negf %27 : vector<2x32xf32>
    %29 = math.exp %28 : vector<2x32xf32>
    %cst_19 = arith.constant 1.000000e+00 : f32
    %30 = vector.broadcast %cst_19 : f32 to vector<2x32xf32>
    %31 = arith.addf %30, %29 : vector<2x32xf32>
    %32 = arith.divf %30, %31 : vector<2x32xf32>
    %33 = vector.extract_strided_slice %20 {offsets = [0, 64], sizes = [2, 32], strides = [1, 1]} : vector<2x128xf32> to vector<2x32xf32>
    %34 = math.tanh %33 : vector<2x32xf32>
    %35 = vector.extract_strided_slice %20 {offsets = [0, 96], sizes = [2, 32], strides = [1, 1]} : vector<2x128xf32> to vector<2x32xf32>
    %36 = arith.negf %35 : vector<2x32xf32>
    %37 = math.exp %36 : vector<2x32xf32>
    %cst_20 = arith.constant 1.000000e+00 : f32
    %38 = vector.broadcast %cst_20 : f32 to vector<2x32xf32>
    %39 = arith.addf %38, %37 : vector<2x32xf32>
    %40 = arith.divf %38, %39 : vector<2x32xf32>
    %41 = arith.mulf %32, %13 : vector<2x32xf32>
    %42 = arith.mulf %26, %34 : vector<2x32xf32>
    %43 = arith.addf %41, %42 : vector<2x32xf32>
    %44 = math.tanh %43 : vector<2x32xf32>
    %45 = arith.mulf %40, %44 : vector<2x32xf32>
    %46 = arith.truncf %45 : vector<2x32xf32> to vector<2x32xbf16>
    %47 = arith.truncf %12 : vector<2x32xf32> to vector<2x32xbf16>
    %c1_21 = arith.constant 1 : index
    %c32_22 = arith.constant 32 : index
    %c0_23 = arith.constant 0 : index
    %48 = vector.load %arg2[%c1_21, %c32_22, %c0_23] : memref<2x64x128xbf16, #tpu.memory_space<vmem>>, vector<1x32x128xbf16>
    %49 = vector.shape_cast %48 : vector<1x32x128xbf16> to vector<32x128xbf16>
    %cst_24 = arith.constant dense<0.000000e+00> : vector<2x128xf32>
    %50 = tpu.matmul %47, %49, %cst_24 {dimension_numbers = #tpu.dot_dimension_numbers<[1], [0], [0], [1], [0, 0, 1, 1], [], []>} : vector<2x32xbf16>, vector<32x128xbf16>, vector<2x128xf32> -> vector<2x128xf32>
    %c1_25 = arith.constant 1 : index
    %c0_26 = arith.constant 0 : index
    %c0_27 = arith.constant 0 : index
    %51 = vector.load %arg2[%c1_25, %c0_26, %c0_27] : memref<2x64x128xbf16, #tpu.memory_space<vmem>>, vector<1x32x128xbf16>
    %52 = vector.shape_cast %51 : vector<1x32x128xbf16> to vector<32x128xbf16>
    %cst_28 = arith.constant dense<0.000000e+00> : vector<2x128xf32>
    %53 = tpu.matmul %46, %52, %cst_28 {dimension_numbers = #tpu.dot_dimension_numbers<[1], [0], [0], [1], [0, 0, 1, 1], [], []>} : vector<2x32xbf16>, vector<32x128xbf16>, vector<2x128xf32> -> vector<2x128xf32>
    %54 = arith.addf %53, %50 : vector<2x128xf32>
    %55 = vector.broadcast %3 : vector<1x128xf32> to vector<2x128xf32>
    %56 = arith.addf %54, %55 : vector<2x128xf32>
    %57 = vector.extract_strided_slice %56 {offsets = [0, 0], sizes = [2, 32], strides = [1, 1]} : vector<2x128xf32> to vector<2x32xf32>
    %58 = arith.negf %57 : vector<2x32xf32>
    %59 = math.exp %58 : vector<2x32xf32>
    %cst_29 = arith.constant 1.000000e+00 : f32
    %60 = vector.broadcast %cst_29 : f32 to vector<2x32xf32>
    %61 = arith.addf %60, %59 : vector<2x32xf32>
    %62 = arith.divf %60, %61 : vector<2x32xf32>
    %63 = vector.extract_strided_slice %56 {offsets = [0, 32], sizes = [2, 32], strides = [1, 1]} : vector<2x128xf32> to vector<2x32xf32>
    %64 = arith.negf %63 : vector<2x32xf32>
    %65 = math.exp %64 : vector<2x32xf32>
    %cst_30 = arith.constant 1.000000e+00 : f32
    %66 = vector.broadcast %cst_30 : f32 to vector<2x32xf32>
    %67 = arith.addf %66, %65 : vector<2x32xf32>
    %68 = arith.divf %66, %67 : vector<2x32xf32>
    %69 = vector.extract_strided_slice %56 {offsets = [0, 64], sizes = [2, 32], strides = [1, 1]} : vector<2x128xf32> to vector<2x32xf32>
    %70 = math.tanh %69 : vector<2x32xf32>
    %71 = vector.extract_strided_slice %56 {offsets = [0, 96], sizes = [2, 32], strides = [1, 1]} : vector<2x128xf32> to vector<2x32xf32>
    %72 = arith.negf %71 : vector<2x32xf32>
    %73 = math.exp %72 : vector<2x32xf32>
    %cst_31 = arith.constant 1.000000e+00 : f32
    %74 = vector.broadcast %cst_31 : f32 to vector<2x32xf32>
    %75 = arith.addf %74, %73 : vector<2x32xf32>
    %76 = arith.divf %74, %75 : vector<2x32xf32>
    %77 = arith.mulf %68, %14 : vector<2x32xf32>
    %78 = arith.mulf %62, %70 : vector<2x32xf32>
    %79 = arith.addf %77, %78 : vector<2x32xf32>
    %80 = math.tanh %79 : vector<2x32xf32>
    %81 = arith.mulf %76, %80 : vector<2x32xf32>
    %82 = arith.truncf %81 : vector<2x32xf32> to vector<2x32xbf16>
    %c0_32 = arith.constant 0 : index
    %c0_33 = arith.constant 0 : index
    %83 = vector.load %arg4[%c0_32, %c0_33] : memref<32x128xbf16, #tpu.memory_space<vmem>>, vector<32x128xbf16>
    %cst_34 = arith.constant dense<0.000000e+00> : vector<2x128xf32>
    %84 = tpu.matmul %82, %83, %cst_34 {dimension_numbers = #tpu.dot_dimension_numbers<[1], [0], [0], [1], [0, 0, 1, 1], [], []>} : vector<2x32xbf16>, vector<32x128xbf16>, vector<2x128xf32> -> vector<2x128xf32>
    %85 = vector.broadcast %4 : vector<1x128xf32> to vector<2x128xf32>
    %86 = arith.addf %84, %85 : vector<2x128xf32>
    %c0_35 = arith.constant 0 : index
    %c0_36 = arith.constant 0 : index
    %87 = vector.load %arg6[%c0_35, %c0_36] : memref<18x128xf32, #tpu.memory_space<vmem>>, vector<2x128xf32>
    tpu.vector_store %arg6[%c0_35, %c0_36], %86 {strides = array<i32>} : memref<18x128xf32, #tpu.memory_space<vmem>>, vector<2x128xf32>,
    %88 = arith.truncf %45 : vector<2x32xf32> to vector<2x32xbf16>
    %c0_37 = arith.constant 0 : index
    %c32_38 = arith.constant 32 : index
    %c0_39 = arith.constant 0 : index
    %89 = vector.load %arg2[%c0_37, %c32_38, %c0_39] : memref<2x64x128xbf16, #tpu.memory_space<vmem>>, vector<1x32x128xbf16>
    %90 = vector.shape_cast %89 : vector<1x32x128xbf16> to vector<32x128xbf16>
    %cst_40 = arith.constant dense<0.000000e+00> : vector<2x128xf32>
    %91 = tpu.matmul %88, %90, %cst_40 {dimension_numbers = #tpu.dot_dimension_numbers<[1], [0], [0], [1], [0, 0, 1, 1], [], []>} : vector<2x32xbf16>, vector<32x128xbf16>, vector<2x128xf32> -> vector<2x128xf32>
    %92 = vector.extract_strided_slice %10 {offsets = [2, 0], sizes = [2, 128], strides = [1, 1]} : vector<18x128xf32> to vector<2x128xf32>
    %93 = arith.addf %92, %91 : vector<2x128xf32>
    %94 = vector.extract_strided_slice %93 {offsets = [0, 0], sizes = [2, 32], strides = [1, 1]} : vector<2x128xf32> to vector<2x32xf32>
    %95 = arith.negf %94 : vector<2x32xf32>
    %96 = math.exp %95 : vector<2x32xf32>
    %cst_41 = arith.constant 1.000000e+00 : f32
    %97 = vector.broadcast %cst_41 : f32 to vector<2x32xf32>
    %98 = arith.addf %97, %96 : vector<2x32xf32>
    %99 = arith.divf %97, %98 : vector<2x32xf32>
    %100 = vector.extract_strided_slice %93 {offsets = [0, 32], sizes = [2, 32], strides = [1, 1]} : vector<2x128xf32> to vector<2x32xf32>
    %101 = arith.negf %100 : vector<2x32xf32>
    %102 = math.exp %101 : vector<2x32xf32>
    %cst_42 = arith.constant 1.000000e+00 : f32
    %103 = vector.broadcast %cst_42 : f32 to vector<2x32xf32>
    %104 = arith.addf %103, %102 : vector<2x32xf32>
    %105 = arith.divf %103, %104 : vector<2x32xf32>
    %106 = vector.extract_strided_slice %93 {offsets = [0, 64], sizes = [2, 32], strides = [1, 1]} : vector<2x128xf32> to vector<2x32xf32>
    %107 = math.tanh %106 : vector<2x32xf32>
    %108 = vector.extract_strided_slice %93 {offsets = [0, 96], sizes = [2, 32], strides = [1, 1]} : vector<2x128xf32> to vector<2x32xf32>
    %109 = arith.negf %108 : vector<2x32xf32>
    %110 = math.exp %109 : vector<2x32xf32>
    %cst_43 = arith.constant 1.000000e+00 : f32
    %111 = vector.broadcast %cst_43 : f32 to vector<2x32xf32>
    %112 = arith.addf %111, %110 : vector<2x32xf32>
    %113 = arith.divf %111, %112 : vector<2x32xf32>
    %114 = arith.mulf %105, %43 : vector<2x32xf32>
    %115 = arith.mulf %99, %107 : vector<2x32xf32>
    %116 = arith.addf %114, %115 : vector<2x32xf32>
    %117 = math.tanh %116 : vector<2x32xf32>
    %118 = arith.mulf %113, %117 : vector<2x32xf32>
    %119 = arith.truncf %118 : vector<2x32xf32> to vector<2x32xbf16>
    %120 = arith.truncf %81 : vector<2x32xf32> to vector<2x32xbf16>
    %c1_44 = arith.constant 1 : index
    %c32_45 = arith.constant 32 : index
    %c0_46 = arith.constant 0 : index
    %121 = vector.load %arg2[%c1_44, %c32_45, %c0_46] : memref<2x64x128xbf16, #tpu.memory_space<vmem>>, vector<1x32x128xbf16>
    %122 = vector.shape_cast %121 : vector<1x32x128xbf16> to vector<32x128xbf16>
    %cst_47 = arith.constant dense<0.000000e+00> : vector<2x128xf32>
    %123 = tpu.matmul %120, %122, %cst_47 {dimension_numbers = #tpu.dot_dimension_numbers<[1], [0], [0], [1], [0, 0, 1, 1], [], []>} : vector<2x32xbf16>, vector<32x128xbf16>, vector<2x128xf32> -> vector<2x128xf32>
    %c1_48 = arith.constant 1 : index
    %c0_49 = arith.constant 0 : index
    %c0_50 = arith.constant 0 : index
    %124 = vector.load %arg2[%c1_48, %c0_49, %c0_50] : memref<2x64x128xbf16, #tpu.memory_space<vmem>>, vector<1x32x128xbf16>
    %125 = vector.shape_cast %124 : vector<1x32x128xbf16> to vector<32x128xbf16>
    %cst_51 = arith.constant dense<0.000000e+00> : vector<2x128xf32>
    %126 = tpu.matmul %119, %125, %cst_51 {dimension_numbers = #tpu.dot_dimension_numbers<[1], [0], [0], [1], [0, 0, 1, 1], [], []>} : vector<2x32xbf16>, vector<32x128xbf16>, vector<2x128xf32> -> vector<2x128xf32>
    %127 = arith.addf %126, %123 : vector<2x128xf32>
    %128 = vector.broadcast %3 : vector<1x128xf32> to vector<2x128xf32>
    %129 = arith.addf %127, %128 : vector<2x128xf32>
    %130 = vector.extract_strided_slice %129 {offsets = [0, 0], sizes = [2, 32], strides = [1, 1]} : vector<2x128xf32> to vector<2x32xf32>
    %131 = arith.negf %130 : vector<2x32xf32>
    %132 = math.exp %131 : vector<2x32xf32>
    %cst_52 = arith.constant 1.000000e+00 : f32
    %133 = vector.broadcast %cst_52 : f32 to vector<2x32xf32>
    %134 = arith.addf %133, %132 : vector<2x32xf32>
    %135 = arith.divf %133, %134 : vector<2x32xf32>
    %136 = vector.extract_strided_slice %129 {offsets = [0, 32], sizes = [2, 32], strides = [1, 1]} : vector<2x128xf32> to vector<2x32xf32>
    %137 = arith.negf %136 : vector<2x32xf32>
    %138 = math.exp %137 : vector<2x32xf32>
    %cst_53 = arith.constant 1.000000e+00 : f32
    %139 = vector.broadcast %cst_53 : f32 to vector<2x32xf32>
    %140 = arith.addf %139, %138 : vector<2x32xf32>
    %141 = arith.divf %139, %140 : vector<2x32xf32>
    %142 = vector.extract_strided_slice %129 {offsets = [0, 64], sizes = [2, 32], strides = [1, 1]} : vector<2x128xf32> to vector<2x32xf32>
    %143 = math.tanh %142 : vector<2x32xf32>
    %144 = vector.extract_strided_slice %129 {offsets = [0, 96], sizes = [2, 32], strides = [1, 1]} : vector<2x128xf32> to vector<2x32xf32>
    %145 = arith.negf %144 : vector<2x32xf32>
    %146 = math.exp %145 : vector<2x32xf32>
    %cst_54 = arith.constant 1.000000e+00 : f32
    %147 = vector.broadcast %cst_54 : f32 to vector<2x32xf32>
    %148 = arith.addf %147, %146 : vector<2x32xf32>
    %149 = arith.divf %147, %148 : vector<2x32xf32>
    %150 = arith.mulf %141, %79 : vector<2x32xf32>
    %151 = arith.mulf %135, %143 : vector<2x32xf32>
    %152 = arith.addf %150, %151 : vector<2x32xf32>
    %153 = math.tanh %152 : vector<2x32xf32>
    %154 = arith.mulf %149, %153 : vector<2x32xf32>
    %155 = arith.truncf %154 : vector<2x32xf32> to vector<2x32xbf16>
    %c0_55 = arith.constant 0 : index
    %c0_56 = arith.constant 0 : index
    %156 = vector.load %arg4[%c0_55, %c0_56] : memref<32x128xbf16, #tpu.memory_space<vmem>>, vector<32x128xbf16>
    %cst_57 = arith.constant dense<0.000000e+00> : vector<2x128xf32>
    %157 = tpu.matmul %155, %156, %cst_57 {dimension_numbers = #tpu.dot_dimension_numbers<[1], [0], [0], [1], [0, 0, 1, 1], [], []>} : vector<2x32xbf16>, vector<32x128xbf16>, vector<2x128xf32> -> vector<2x128xf32>
    %158 = vector.broadcast %4 : vector<1x128xf32> to vector<2x128xf32>
    %159 = arith.addf %157, %158 : vector<2x128xf32>
    %c2 = arith.constant 2 : index
    %c0_58 = arith.constant 0 : index
    %160 = vector.load %arg6[%c2, %c0_58] : memref<18x128xf32, #tpu.memory_space<vmem>>, vector<2x128xf32>
    tpu.vector_store %arg6[%c2, %c0_58], %159 {strides = array<i32>} : memref<18x128xf32, #tpu.memory_space<vmem>>, vector<2x128xf32>,
    %161 = arith.truncf %118 : vector<2x32xf32> to vector<2x32xbf16>
    %c0_59 = arith.constant 0 : index
    %c32_60 = arith.constant 32 : index
    %c0_61 = arith.constant 0 : index
    %162 = vector.load %arg2[%c0_59, %c32_60, %c0_61] : memref<2x64x128xbf16, #tpu.memory_space<vmem>>, vector<1x32x128xbf16>
    %163 = vector.shape_cast %162 : vector<1x32x128xbf16> to vector<32x128xbf16>
    %cst_62 = arith.constant dense<0.000000e+00> : vector<2x128xf32>
    %164 = tpu.matmul %161, %163, %cst_62 {dimension_numbers = #tpu.dot_dimension_numbers<[1], [0], [0], [1], [0, 0, 1, 1], [], []>} : vector<2x32xbf16>, vector<32x128xbf16>, vector<2x128xf32> -> vector<2x128xf32>
    %165 = vector.extract_strided_slice %10 {offsets = [4, 0], sizes = [2, 128], strides = [1, 1]} : vector<18x128xf32> to vector<2x128xf32>
    %166 = arith.addf %165, %164 : vector<2x128xf32>
    %167 = vector.extract_strided_slice %166 {offsets = [0, 0], sizes = [2, 32], strides = [1, 1]} : vector<2x128xf32> to vector<2x32xf32>
    %168 = arith.negf %167 : vector<2x32xf32>
    %169 = math.exp %168 : vector<2x32xf32>
    %cst_63 = arith.constant 1.000000e+00 : f32
    %170 = vector.broadcast %cst_63 : f32 to vector<2x32xf32>
    %171 = arith.addf %170, %169 : vector<2x32xf32>
    %172 = arith.divf %170, %171 : vector<2x32xf32>
    %173 = vector.extract_strided_slice %166 {offsets = [0, 32], sizes = [2, 32], strides = [1, 1]} : vector<2x128xf32> to vector<2x32xf32>
    %174 = arith.negf %173 : vector<2x32xf32>
    %175 = math.exp %174 : vector<2x32xf32>
    %cst_64 = arith.constant 1.000000e+00 : f32
    %176 = vector.broadcast %cst_64 : f32 to vector<2x32xf32>
    %177 = arith.addf %176, %175 : vector<2x32xf32>
    %178 = arith.divf %176, %177 : vector<2x32xf32>
    %179 = vector.extract_strided_slice %166 {offsets = [0, 64], sizes = [2, 32], strides = [1, 1]} : vector<2x128xf32> to vector<2x32xf32>
    %180 = math.tanh %179 : vector<2x32xf32>
    %181 = vector.extract_strided_slice %166 {offsets = [0, 96], sizes = [2, 32], strides = [1, 1]} : vector<2x128xf32> to vector<2x32xf32>
    %182 = arith.negf %181 : vector<2x32xf32>
    %183 = math.exp %182 : vector<2x32xf32>
    %cst_65 = arith.constant 1.000000e+00 : f32
    %184 = vector.broadcast %cst_65 : f32 to vector<2x32xf32>
    %185 = arith.addf %184, %183 : vector<2x32xf32>
    %186 = arith.divf %184, %185 : vector<2x32xf32>
    %187 = arith.mulf %178, %116 : vector<2x32xf32>
    %188 = arith.mulf %172, %180 : vector<2x32xf32>
    %189 = arith.addf %187, %188 : vector<2x32xf32>
    %190 = math.tanh %189 : vector<2x32xf32>
    %191 = arith.mulf %186, %190 : vector<2x32xf32>
    %192 = arith.truncf %191 : vector<2x32xf32> to vector<2x32xbf16>
    %193 = arith.truncf %154 : vector<2x32xf32> to vector<2x32xbf16>
    %c1_66 = arith.constant 1 : index
    %c32_67 = arith.constant 32 : index
    %c0_68 = arith.constant 0 : index
    %194 = vector.load %arg2[%c1_66, %c32_67, %c0_68] : memref<2x64x128xbf16, #tpu.memory_space<vmem>>, vector<1x32x128xbf16>
    %195 = vector.shape_cast %194 : vector<1x32x128xbf16> to vector<32x128xbf16>
    %cst_69 = arith.constant dense<0.000000e+00> : vector<2x128xf32>
    %196 = tpu.matmul %193, %195, %cst_69 {dimension_numbers = #tpu.dot_dimension_numbers<[1], [0], [0], [1], [0, 0, 1, 1], [], []>} : vector<2x32xbf16>, vector<32x128xbf16>, vector<2x128xf32> -> vector<2x128xf32>
    %c1_70 = arith.constant 1 : index
    %c0_71 = arith.constant 0 : index
    %c0_72 = arith.constant 0 : index
    %197 = vector.load %arg2[%c1_70, %c0_71, %c0_72] : memref<2x64x128xbf16, #tpu.memory_space<vmem>>, vector<1x32x128xbf16>
    %198 = vector.shape_cast %197 : vector<1x32x128xbf16> to vector<32x128xbf16>
    %cst_73 = arith.constant dense<0.000000e+00> : vector<2x128xf32>
    %199 = tpu.matmul %192, %198, %cst_73 {dimension_numbers = #tpu.dot_dimension_numbers<[1], [0], [0], [1], [0, 0, 1, 1], [], []>} : vector<2x32xbf16>, vector<32x128xbf16>, vector<2x128xf32> -> vector<2x128xf32>
    %200 = arith.addf %199, %196 : vector<2x128xf32>
    %201 = vector.broadcast %3 : vector<1x128xf32> to vector<2x128xf32>
    %202 = arith.addf %200, %201 : vector<2x128xf32>
    %203 = vector.extract_strided_slice %202 {offsets = [0, 0], sizes = [2, 32], strides = [1, 1]} : vector<2x128xf32> to vector<2x32xf32>
    %204 = arith.negf %203 : vector<2x32xf32>
    %205 = math.exp %204 : vector<2x32xf32>
    %cst_74 = arith.constant 1.000000e+00 : f32
    %206 = vector.broadcast %cst_74 : f32 to vector<2x32xf32>
    %207 = arith.addf %206, %205 : vector<2x32xf32>
    %208 = arith.divf %206, %207 : vector<2x32xf32>
    %209 = vector.extract_strided_slice %202 {offsets = [0, 32], sizes = [2, 32], strides = [1, 1]} : vector<2x128xf32> to vector<2x32xf32>
    %210 = arith.negf %209 : vector<2x32xf32>
    %211 = math.exp %210 : vector<2x32xf32>
    %cst_75 = arith.constant 1.000000e+00 : f32
    %212 = vector.broadcast %cst_75 : f32 to vector<2x32xf32>
    %213 = arith.addf %212, %211 : vector<2x32xf32>
    %214 = arith.divf %212, %213 : vector<2x32xf32>
    %215 = vector.extract_strided_slice %202 {offsets = [0, 64], sizes = [2, 32], strides = [1, 1]} : vector<2x128xf32> to vector<2x32xf32>
    %216 = math.tanh %215 : vector<2x32xf32>
    %217 = vector.extract_strided_slice %202 {offsets = [0, 96], sizes = [2, 32], strides = [1, 1]} : vector<2x128xf32> to vector<2x32xf32>
    %218 = arith.negf %217 : vector<2x32xf32>
    %219 = math.exp %218 : vector<2x32xf32>
    %cst_76 = arith.constant 1.000000e+00 : f32
    %220 = vector.broadcast %cst_76 : f32 to vector<2x32xf32>
    %221 = arith.addf %220, %219 : vector<2x32xf32>
    %222 = arith.divf %220, %221 : vector<2x32xf32>
    %223 = arith.mulf %214, %152 : vector<2x32xf32>
    %224 = arith.mulf %208, %216 : vector<2x32xf32>
    %225 = arith.addf %223, %224 : vector<2x32xf32>
    %226 = math.tanh %225 : vector<2x32xf32>
    %227 = arith.mulf %222, %226 : vector<2x32xf32>
    %228 = arith.truncf %227 : vector<2x32xf32> to vector<2x32xbf16>
    %c0_77 = arith.constant 0 : index
    %c0_78 = arith.constant 0 : index
    %229 = vector.load %arg4[%c0_77, %c0_78] : memref<32x128xbf16, #tpu.memory_space<vmem>>, vector<32x128xbf16>
    %cst_79 = arith.constant dense<0.000000e+00> : vector<2x128xf32>
    %230 = tpu.matmul %228, %229, %cst_79 {dimension_numbers = #tpu.dot_dimension_numbers<[1], [0], [0], [1], [0, 0, 1, 1], [], []>} : vector<2x32xbf16>, vector<32x128xbf16>, vector<2x128xf32> -> vector<2x128xf32>
    %231 = vector.broadcast %4 : vector<1x128xf32> to vector<2x128xf32>
    %232 = arith.addf %230, %231 : vector<2x128xf32>
    %c4 = arith.constant 4 : index
    %c0_80 = arith.constant 0 : index
    %233 = vector.load %arg6[%c4, %c0_80] : memref<18x128xf32, #tpu.memory_space<vmem>>, vector<2x128xf32>
    tpu.vector_store %arg6[%c4, %c0_80], %232 {strides = array<i32>} : memref<18x128xf32, #tpu.memory_space<vmem>>, vector<2x128xf32>,
    %234 = arith.truncf %191 : vector<2x32xf32> to vector<2x32xbf16>
    %c0_81 = arith.constant 0 : index
    %c32_82 = arith.constant 32 : index
    %c0_83 = arith.constant 0 : index
    %235 = vector.load %arg2[%c0_81, %c32_82, %c0_83] : memref<2x64x128xbf16, #tpu.memory_space<vmem>>, vector<1x32x128xbf16>
    %236 = vector.shape_cast %235 : vector<1x32x128xbf16> to vector<32x128xbf16>
    %cst_84 = arith.constant dense<0.000000e+00> : vector<2x128xf32>
    %237 = tpu.matmul %234, %236, %cst_84 {dimension_numbers = #tpu.dot_dimension_numbers<[1], [0], [0], [1], [0, 0, 1, 1], [], []>} : vector<2x32xbf16>, vector<32x128xbf16>, vector<2x128xf32> -> vector<2x128xf32>
    %238 = vector.extract_strided_slice %10 {offsets = [6, 0], sizes = [2, 128], strides = [1, 1]} : vector<18x128xf32> to vector<2x128xf32>
    %239 = arith.addf %238, %237 : vector<2x128xf32>
    %240 = vector.extract_strided_slice %239 {offsets = [0, 0], sizes = [2, 32], strides = [1, 1]} : vector<2x128xf32> to vector<2x32xf32>
    %241 = arith.negf %240 : vector<2x32xf32>
    %242 = math.exp %241 : vector<2x32xf32>
    %cst_85 = arith.constant 1.000000e+00 : f32
    %243 = vector.broadcast %cst_85 : f32 to vector<2x32xf32>
    %244 = arith.addf %243, %242 : vector<2x32xf32>
    %245 = arith.divf %243, %244 : vector<2x32xf32>
    %246 = vector.extract_strided_slice %239 {offsets = [0, 32], sizes = [2, 32], strides = [1, 1]} : vector<2x128xf32> to vector<2x32xf32>
    %247 = arith.negf %246 : vector<2x32xf32>
    %248 = math.exp %247 : vector<2x32xf32>
    %cst_86 = arith.constant 1.000000e+00 : f32
    %249 = vector.broadcast %cst_86 : f32 to vector<2x32xf32>
    %250 = arith.addf %249, %248 : vector<2x32xf32>
    %251 = arith.divf %249, %250 : vector<2x32xf32>
    %252 = vector.extract_strided_slice %239 {offsets = [0, 64], sizes = [2, 32], strides = [1, 1]} : vector<2x128xf32> to vector<2x32xf32>
    %253 = math.tanh %252 : vector<2x32xf32>
    %254 = vector.extract_strided_slice %239 {offsets = [0, 96], sizes = [2, 32], strides = [1, 1]} : vector<2x128xf32> to vector<2x32xf32>
    %255 = arith.negf %254 : vector<2x32xf32>
    %256 = math.exp %255 : vector<2x32xf32>
    %cst_87 = arith.constant 1.000000e+00 : f32
    %257 = vector.broadcast %cst_87 : f32 to vector<2x32xf32>
    %258 = arith.addf %257, %256 : vector<2x32xf32>
    %259 = arith.divf %257, %258 : vector<2x32xf32>
    %260 = arith.mulf %251, %189 : vector<2x32xf32>
    %261 = arith.mulf %245, %253 : vector<2x32xf32>
    %262 = arith.addf %260, %261 : vector<2x32xf32>
    %263 = math.tanh %262 : vector<2x32xf32>
    %264 = arith.mulf %259, %263 : vector<2x32xf32>
    %265 = arith.truncf %264 : vector<2x32xf32> to vector<2x32xbf16>
    %266 = arith.truncf %227 : vector<2x32xf32> to vector<2x32xbf16>
    %c1_88 = arith.constant 1 : index
    %c32_89 = arith.constant 32 : index
    %c0_90 = arith.constant 0 : index
    %267 = vector.load %arg2[%c1_88, %c32_89, %c0_90] : memref<2x64x128xbf16, #tpu.memory_space<vmem>>, vector<1x32x128xbf16>
    %268 = vector.shape_cast %267 : vector<1x32x128xbf16> to vector<32x128xbf16>
    %cst_91 = arith.constant dense<0.000000e+00> : vector<2x128xf32>
    %269 = tpu.matmul %266, %268, %cst_91 {dimension_numbers = #tpu.dot_dimension_numbers<[1], [0], [0], [1], [0, 0, 1, 1], [], []>} : vector<2x32xbf16>, vector<32x128xbf16>, vector<2x128xf32> -> vector<2x128xf32>
    %c1_92 = arith.constant 1 : index
    %c0_93 = arith.constant 0 : index
    %c0_94 = arith.constant 0 : index
    %270 = vector.load %arg2[%c1_92, %c0_93, %c0_94] : memref<2x64x128xbf16, #tpu.memory_space<vmem>>, vector<1x32x128xbf16>
    %271 = vector.shape_cast %270 : vector<1x32x128xbf16> to vector<32x128xbf16>
    %cst_95 = arith.constant dense<0.000000e+00> : vector<2x128xf32>
    %272 = tpu.matmul %265, %271, %cst_95 {dimension_numbers = #tpu.dot_dimension_numbers<[1], [0], [0], [1], [0, 0, 1, 1], [], []>} : vector<2x32xbf16>, vector<32x128xbf16>, vector<2x128xf32> -> vector<2x128xf32>
    %273 = arith.addf %272, %269 : vector<2x128xf32>
    %274 = vector.broadcast %3 : vector<1x128xf32> to vector<2x128xf32>
    %275 = arith.addf %273, %274 : vector<2x128xf32>
    %276 = vector.extract_strided_slice %275 {offsets = [0, 0], sizes = [2, 32], strides = [1, 1]} : vector<2x128xf32> to vector<2x32xf32>
    %277 = arith.negf %276 : vector<2x32xf32>
    %278 = math.exp %277 : vector<2x32xf32>
    %cst_96 = arith.constant 1.000000e+00 : f32
    %279 = vector.broadcast %cst_96 : f32 to vector<2x32xf32>
    %280 = arith.addf %279, %278 : vector<2x32xf32>
    %281 = arith.divf %279, %280 : vector<2x32xf32>
    %282 = vector.extract_strided_slice %275 {offsets = [0, 32], sizes = [2, 32], strides = [1, 1]} : vector<2x128xf32> to vector<2x32xf32>
    %283 = arith.negf %282 : vector<2x32xf32>
    %284 = math.exp %283 : vector<2x32xf32>
    %cst_97 = arith.constant 1.000000e+00 : f32
    %285 = vector.broadcast %cst_97 : f32 to vector<2x32xf32>
    %286 = arith.addf %285, %284 : vector<2x32xf32>
    %287 = arith.divf %285, %286 : vector<2x32xf32>
    %288 = vector.extract_strided_slice %275 {offsets = [0, 64], sizes = [2, 32], strides = [1, 1]} : vector<2x128xf32> to vector<2x32xf32>
    %289 = math.tanh %288 : vector<2x32xf32>
    %290 = vector.extract_strided_slice %275 {offsets = [0, 96], sizes = [2, 32], strides = [1, 1]} : vector<2x128xf32> to vector<2x32xf32>
    %291 = arith.negf %290 : vector<2x32xf32>
    %292 = math.exp %291 : vector<2x32xf32>
    %cst_98 = arith.constant 1.000000e+00 : f32
    %293 = vector.broadcast %cst_98 : f32 to vector<2x32xf32>
    %294 = arith.addf %293, %292 : vector<2x32xf32>
    %295 = arith.divf %293, %294 : vector<2x32xf32>
    %296 = arith.mulf %287, %225 : vector<2x32xf32>
    %297 = arith.mulf %281, %289 : vector<2x32xf32>
    %298 = arith.addf %296, %297 : vector<2x32xf32>
    %299 = math.tanh %298 : vector<2x32xf32>
    %300 = arith.mulf %295, %299 : vector<2x32xf32>
    %301 = arith.truncf %300 : vector<2x32xf32> to vector<2x32xbf16>
    %c0_99 = arith.constant 0 : index
    %c0_100 = arith.constant 0 : index
    %302 = vector.load %arg4[%c0_99, %c0_100] : memref<32x128xbf16, #tpu.memory_space<vmem>>, vector<32x128xbf16>
    %cst_101 = arith.constant dense<0.000000e+00> : vector<2x128xf32>
    %303 = tpu.matmul %301, %302, %cst_101 {dimension_numbers = #tpu.dot_dimension_numbers<[1], [0], [0], [1], [0, 0, 1, 1], [], []>} : vector<2x32xbf16>, vector<32x128xbf16>, vector<2x128xf32> -> vector<2x128xf32>
    %304 = vector.broadcast %4 : vector<1x128xf32> to vector<2x128xf32>
    %305 = arith.addf %303, %304 : vector<2x128xf32>
    %c6 = arith.constant 6 : index
    %c0_102 = arith.constant 0 : index
    %306 = vector.load %arg6[%c6, %c0_102] : memref<18x128xf32, #tpu.memory_space<vmem>>, vector<2x128xf32>
    tpu.vector_store %arg6[%c6, %c0_102], %305 {strides = array<i32>} : memref<18x128xf32, #tpu.memory_space<vmem>>, vector<2x128xf32>,
    %307 = arith.truncf %264 : vector<2x32xf32> to vector<2x32xbf16>
    %c0_103 = arith.constant 0 : index
    %c32_104 = arith.constant 32 : index
    %c0_105 = arith.constant 0 : index
    %308 = vector.load %arg2[%c0_103, %c32_104, %c0_105] : memref<2x64x128xbf16, #tpu.memory_space<vmem>>, vector<1x32x128xbf16>
    %309 = vector.shape_cast %308 : vector<1x32x128xbf16> to vector<32x128xbf16>
    %cst_106 = arith.constant dense<0.000000e+00> : vector<2x128xf32>
    %310 = tpu.matmul %307, %309, %cst_106 {dimension_numbers = #tpu.dot_dimension_numbers<[1], [0], [0], [1], [0, 0, 1, 1], [], []>} : vector<2x32xbf16>, vector<32x128xbf16>, vector<2x128xf32> -> vector<2x128xf32>
    %311 = vector.extract_strided_slice %10 {offsets = [8, 0], sizes = [2, 128], strides = [1, 1]} : vector<18x128xf32> to vector<2x128xf32>
    %312 = arith.addf %311, %310 : vector<2x128xf32>
    %313 = vector.extract_strided_slice %312 {offsets = [0, 0], sizes = [2, 32], strides = [1, 1]} : vector<2x128xf32> to vector<2x32xf32>
    %314 = arith.negf %313 : vector<2x32xf32>
    %315 = math.exp %314 : vector<2x32xf32>
    %cst_107 = arith.constant 1.000000e+00 : f32
    %316 = vector.broadcast %cst_107 : f32 to vector<2x32xf32>
    %317 = arith.addf %316, %315 : vector<2x32xf32>
    %318 = arith.divf %316, %317 : vector<2x32xf32>
    %319 = vector.extract_strided_slice %312 {offsets = [0, 32], sizes = [2, 32], strides = [1, 1]} : vector<2x128xf32> to vector<2x32xf32>
    %320 = arith.negf %319 : vector<2x32xf32>
    %321 = math.exp %320 : vector<2x32xf32>
    %cst_108 = arith.constant 1.000000e+00 : f32
    %322 = vector.broadcast %cst_108 : f32 to vector<2x32xf32>
    %323 = arith.addf %322, %321 : vector<2x32xf32>
    %324 = arith.divf %322, %323 : vector<2x32xf32>
    %325 = vector.extract_strided_slice %312 {offsets = [0, 64], sizes = [2, 32], strides = [1, 1]} : vector<2x128xf32> to vector<2x32xf32>
    %326 = math.tanh %325 : vector<2x32xf32>
    %327 = vector.extract_strided_slice %312 {offsets = [0, 96], sizes = [2, 32], strides = [1, 1]} : vector<2x128xf32> to vector<2x32xf32>
    %328 = arith.negf %327 : vector<2x32xf32>
    %329 = math.exp %328 : vector<2x32xf32>
    %cst_109 = arith.constant 1.000000e+00 : f32
    %330 = vector.broadcast %cst_109 : f32 to vector<2x32xf32>
    %331 = arith.addf %330, %329 : vector<2x32xf32>
    %332 = arith.divf %330, %331 : vector<2x32xf32>
    %333 = arith.mulf %324, %262 : vector<2x32xf32>
    %334 = arith.mulf %318, %326 : vector<2x32xf32>
    %335 = arith.addf %333, %334 : vector<2x32xf32>
    %336 = math.tanh %335 : vector<2x32xf32>
    %337 = arith.mulf %332, %336 : vector<2x32xf32>
    %338 = arith.truncf %337 : vector<2x32xf32> to vector<2x32xbf16>
    %339 = arith.truncf %300 : vector<2x32xf32> to vector<2x32xbf16>
    %c1_110 = arith.constant 1 : index
    %c32_111 = arith.constant 32 : index
    %c0_112 = arith.constant 0 : index
    %340 = vector.load %arg2[%c1_110, %c32_111, %c0_112] : memref<2x64x128xbf16, #tpu.memory_space<vmem>>, vector<1x32x128xbf16>
    %341 = vector.shape_cast %340 : vector<1x32x128xbf16> to vector<32x128xbf16>
    %cst_113 = arith.constant dense<0.000000e+00> : vector<2x128xf32>
    %342 = tpu.matmul %339, %341, %cst_113 {dimension_numbers = #tpu.dot_dimension_numbers<[1], [0], [0], [1], [0, 0, 1, 1], [], []>} : vector<2x32xbf16>, vector<32x128xbf16>, vector<2x128xf32> -> vector<2x128xf32>
    %c1_114 = arith.constant 1 : index
    %c0_115 = arith.constant 0 : index
    %c0_116 = arith.constant 0 : index
    %343 = vector.load %arg2[%c1_114, %c0_115, %c0_116] : memref<2x64x128xbf16, #tpu.memory_space<vmem>>, vector<1x32x128xbf16>
    %344 = vector.shape_cast %343 : vector<1x32x128xbf16> to vector<32x128xbf16>
    %cst_117 = arith.constant dense<0.000000e+00> : vector<2x128xf32>
    %345 = tpu.matmul %338, %344, %cst_117 {dimension_numbers = #tpu.dot_dimension_numbers<[1], [0], [0], [1], [0, 0, 1, 1], [], []>} : vector<2x32xbf16>, vector<32x128xbf16>, vector<2x128xf32> -> vector<2x128xf32>
    %346 = arith.addf %345, %342 : vector<2x128xf32>
    %347 = vector.broadcast %3 : vector<1x128xf32> to vector<2x128xf32>
    %348 = arith.addf %346, %347 : vector<2x128xf32>
    %349 = vector.extract_strided_slice %348 {offsets = [0, 0], sizes = [2, 32], strides = [1, 1]} : vector<2x128xf32> to vector<2x32xf32>
    %350 = arith.negf %349 : vector<2x32xf32>
    %351 = math.exp %350 : vector<2x32xf32>
    %cst_118 = arith.constant 1.000000e+00 : f32
    %352 = vector.broadcast %cst_118 : f32 to vector<2x32xf32>
    %353 = arith.addf %352, %351 : vector<2x32xf32>
    %354 = arith.divf %352, %353 : vector<2x32xf32>
    %355 = vector.extract_strided_slice %348 {offsets = [0, 32], sizes = [2, 32], strides = [1, 1]} : vector<2x128xf32> to vector<2x32xf32>
    %356 = arith.negf %355 : vector<2x32xf32>
    %357 = math.exp %356 : vector<2x32xf32>
    %cst_119 = arith.constant 1.000000e+00 : f32
    %358 = vector.broadcast %cst_119 : f32 to vector<2x32xf32>
    %359 = arith.addf %358, %357 : vector<2x32xf32>
    %360 = arith.divf %358, %359 : vector<2x32xf32>
    %361 = vector.extract_strided_slice %348 {offsets = [0, 64], sizes = [2, 32], strides = [1, 1]} : vector<2x128xf32> to vector<2x32xf32>
    %362 = math.tanh %361 : vector<2x32xf32>
    %363 = vector.extract_strided_slice %348 {offsets = [0, 96], sizes = [2, 32], strides = [1, 1]} : vector<2x128xf32> to vector<2x32xf32>
    %364 = arith.negf %363 : vector<2x32xf32>
    %365 = math.exp %364 : vector<2x32xf32>
    %cst_120 = arith.constant 1.000000e+00 : f32
    %366 = vector.broadcast %cst_120 : f32 to vector<2x32xf32>
    %367 = arith.addf %366, %365 : vector<2x32xf32>
    %368 = arith.divf %366, %367 : vector<2x32xf32>
    %369 = arith.mulf %360, %298 : vector<2x32xf32>
    %370 = arith.mulf %354, %362 : vector<2x32xf32>
    %371 = arith.addf %369, %370 : vector<2x32xf32>
    %372 = math.tanh %371 : vector<2x32xf32>
    %373 = arith.mulf %368, %372 : vector<2x32xf32>
    %374 = arith.truncf %373 : vector<2x32xf32> to vector<2x32xbf16>
    %c0_121 = arith.constant 0 : index
    %c0_122 = arith.constant 0 : index
    %375 = vector.load %arg4[%c0_121, %c0_122] : memref<32x128xbf16, #tpu.memory_space<vmem>>, vector<32x128xbf16>
    %cst_123 = arith.constant dense<0.000000e+00> : vector<2x128xf32>
    %376 = tpu.matmul %374, %375, %cst_123 {dimension_numbers = #tpu.dot_dimension_numbers<[1], [0], [0], [1], [0, 0, 1, 1], [], []>} : vector<2x32xbf16>, vector<32x128xbf16>, vector<2x128xf32> -> vector<2x128xf32>
    %377 = vector.broadcast %4 : vector<1x128xf32> to vector<2x128xf32>
    %378 = arith.addf %376, %377 : vector<2x128xf32>
    %c8 = arith.constant 8 : index
    %c0_124 = arith.constant 0 : index
    %379 = vector.load %arg6[%c8, %c0_124] : memref<18x128xf32, #tpu.memory_space<vmem>>, vector<2x128xf32>
    tpu.vector_store %arg6[%c8, %c0_124], %378 {strides = array<i32>} : memref<18x128xf32, #tpu.memory_space<vmem>>, vector<2x128xf32>,
    %380 = arith.truncf %337 : vector<2x32xf32> to vector<2x32xbf16>
    %c0_125 = arith.constant 0 : index
    %c32_126 = arith.constant 32 : index
    %c0_127 = arith.constant 0 : index
    %381 = vector.load %arg2[%c0_125, %c32_126, %c0_127] : memref<2x64x128xbf16, #tpu.memory_space<vmem>>, vector<1x32x128xbf16>
    %382 = vector.shape_cast %381 : vector<1x32x128xbf16> to vector<32x128xbf16>
    %cst_128 = arith.constant dense<0.000000e+00> : vector<2x128xf32>
    %383 = tpu.matmul %380, %382, %cst_128 {dimension_numbers = #tpu.dot_dimension_numbers<[1], [0], [0], [1], [0, 0, 1, 1], [], []>} : vector<2x32xbf16>, vector<32x128xbf16>, vector<2x128xf32> -> vector<2x128xf32>
    %384 = vector.extract_strided_slice %10 {offsets = [10, 0], sizes = [2, 128], strides = [1, 1]} : vector<18x128xf32> to vector<2x128xf32>
    %385 = arith.addf %384, %383 : vector<2x128xf32>
    %386 = vector.extract_strided_slice %385 {offsets = [0, 0], sizes = [2, 32], strides = [1, 1]} : vector<2x128xf32> to vector<2x32xf32>
    %387 = arith.negf %386 : vector<2x32xf32>
    %388 = math.exp %387 : vector<2x32xf32>
    %cst_129 = arith.constant 1.000000e+00 : f32
    %389 = vector.broadcast %cst_129 : f32 to vector<2x32xf32>
    %390 = arith.addf %389, %388 : vector<2x32xf32>
    %391 = arith.divf %389, %390 : vector<2x32xf32>
    %392 = vector.extract_strided_slice %385 {offsets = [0, 32], sizes = [2, 32], strides = [1, 1]} : vector<2x128xf32> to vector<2x32xf32>
    %393 = arith.negf %392 : vector<2x32xf32>
    %394 = math.exp %393 : vector<2x32xf32>
    %cst_130 = arith.constant 1.000000e+00 : f32
    %395 = vector.broadcast %cst_130 : f32 to vector<2x32xf32>
    %396 = arith.addf %395, %394 : vector<2x32xf32>
    %397 = arith.divf %395, %396 : vector<2x32xf32>
    %398 = vector.extract_strided_slice %385 {offsets = [0, 64], sizes = [2, 32], strides = [1, 1]} : vector<2x128xf32> to vector<2x32xf32>
    %399 = math.tanh %398 : vector<2x32xf32>
    %400 = vector.extract_strided_slice %385 {offsets = [0, 96], sizes = [2, 32], strides = [1, 1]} : vector<2x128xf32> to vector<2x32xf32>
    %401 = arith.negf %400 : vector<2x32xf32>
    %402 = math.exp %401 : vector<2x32xf32>
    %cst_131 = arith.constant 1.000000e+00 : f32
    %403 = vector.broadcast %cst_131 : f32 to vector<2x32xf32>
    %404 = arith.addf %403, %402 : vector<2x32xf32>
    %405 = arith.divf %403, %404 : vector<2x32xf32>
    %406 = arith.mulf %397, %335 : vector<2x32xf32>
    %407 = arith.mulf %391, %399 : vector<2x32xf32>
    %408 = arith.addf %406, %407 : vector<2x32xf32>
    %409 = math.tanh %408 : vector<2x32xf32>
    %410 = arith.mulf %405, %409 : vector<2x32xf32>
    %411 = arith.truncf %410 : vector<2x32xf32> to vector<2x32xbf16>
    %412 = arith.truncf %373 : vector<2x32xf32> to vector<2x32xbf16>
    %c1_132 = arith.constant 1 : index
    %c32_133 = arith.constant 32 : index
    %c0_134 = arith.constant 0 : index
    %413 = vector.load %arg2[%c1_132, %c32_133, %c0_134] : memref<2x64x128xbf16, #tpu.memory_space<vmem>>, vector<1x32x128xbf16>
    %414 = vector.shape_cast %413 : vector<1x32x128xbf16> to vector<32x128xbf16>
    %cst_135 = arith.constant dense<0.000000e+00> : vector<2x128xf32>
    %415 = tpu.matmul %412, %414, %cst_135 {dimension_numbers = #tpu.dot_dimension_numbers<[1], [0], [0], [1], [0, 0, 1, 1], [], []>} : vector<2x32xbf16>, vector<32x128xbf16>, vector<2x128xf32> -> vector<2x128xf32>
    %c1_136 = arith.constant 1 : index
    %c0_137 = arith.constant 0 : index
    %c0_138 = arith.constant 0 : index
    %416 = vector.load %arg2[%c1_136, %c0_137, %c0_138] : memref<2x64x128xbf16, #tpu.memory_space<vmem>>, vector<1x32x128xbf16>
    %417 = vector.shape_cast %416 : vector<1x32x128xbf16> to vector<32x128xbf16>
    %cst_139 = arith.constant dense<0.000000e+00> : vector<2x128xf32>
    %418 = tpu.matmul %411, %417, %cst_139 {dimension_numbers = #tpu.dot_dimension_numbers<[1], [0], [0], [1], [0, 0, 1, 1], [], []>} : vector<2x32xbf16>, vector<32x128xbf16>, vector<2x128xf32> -> vector<2x128xf32>
    %419 = arith.addf %418, %415 : vector<2x128xf32>
    %420 = vector.broadcast %3 : vector<1x128xf32> to vector<2x128xf32>
    %421 = arith.addf %419, %420 : vector<2x128xf32>
    %422 = vector.extract_strided_slice %421 {offsets = [0, 0], sizes = [2, 32], strides = [1, 1]} : vector<2x128xf32> to vector<2x32xf32>
    %423 = arith.negf %422 : vector<2x32xf32>
    %424 = math.exp %423 : vector<2x32xf32>
    %cst_140 = arith.constant 1.000000e+00 : f32
    %425 = vector.broadcast %cst_140 : f32 to vector<2x32xf32>
    %426 = arith.addf %425, %424 : vector<2x32xf32>
    %427 = arith.divf %425, %426 : vector<2x32xf32>
    %428 = vector.extract_strided_slice %421 {offsets = [0, 32], sizes = [2, 32], strides = [1, 1]} : vector<2x128xf32> to vector<2x32xf32>
    %429 = arith.negf %428 : vector<2x32xf32>
    %430 = math.exp %429 : vector<2x32xf32>
    %cst_141 = arith.constant 1.000000e+00 : f32
    %431 = vector.broadcast %cst_141 : f32 to vector<2x32xf32>
    %432 = arith.addf %431, %430 : vector<2x32xf32>
    %433 = arith.divf %431, %432 : vector<2x32xf32>
    %434 = vector.extract_strided_slice %421 {offsets = [0, 64], sizes = [2, 32], strides = [1, 1]} : vector<2x128xf32> to vector<2x32xf32>
    %435 = math.tanh %434 : vector<2x32xf32>
    %436 = vector.extract_strided_slice %421 {offsets = [0, 96], sizes = [2, 32], strides = [1, 1]} : vector<2x128xf32> to vector<2x32xf32>
    %437 = arith.negf %436 : vector<2x32xf32>
    %438 = math.exp %437 : vector<2x32xf32>
    %cst_142 = arith.constant 1.000000e+00 : f32
    %439 = vector.broadcast %cst_142 : f32 to vector<2x32xf32>
    %440 = arith.addf %439, %438 : vector<2x32xf32>
    %441 = arith.divf %439, %440 : vector<2x32xf32>
    %442 = arith.mulf %433, %371 : vector<2x32xf32>
    %443 = arith.mulf %427, %435 : vector<2x32xf32>
    %444 = arith.addf %442, %443 : vector<2x32xf32>
    %445 = math.tanh %444 : vector<2x32xf32>
    %446 = arith.mulf %441, %445 : vector<2x32xf32>
    %447 = arith.truncf %446 : vector<2x32xf32> to vector<2x32xbf16>
    %c0_143 = arith.constant 0 : index
    %c0_144 = arith.constant 0 : index
    %448 = vector.load %arg4[%c0_143, %c0_144] : memref<32x128xbf16, #tpu.memory_space<vmem>>, vector<32x128xbf16>
    %cst_145 = arith.constant dense<0.000000e+00> : vector<2x128xf32>
    %449 = tpu.matmul %447, %448, %cst_145 {dimension_numbers = #tpu.dot_dimension_numbers<[1], [0], [0], [1], [0, 0, 1, 1], [], []>} : vector<2x32xbf16>, vector<32x128xbf16>, vector<2x128xf32> -> vector<2x128xf32>
    %450 = vector.broadcast %4 : vector<1x128xf32> to vector<2x128xf32>
    %451 = arith.addf %449, %450 : vector<2x128xf32>
    %c10 = arith.constant 10 : index
    %c0_146 = arith.constant 0 : index
    %452 = vector.load %arg6[%c10, %c0_146] : memref<18x128xf32, #tpu.memory_space<vmem>>, vector<2x128xf32>
    tpu.vector_store %arg6[%c10, %c0_146], %451 {strides = array<i32>} : memref<18x128xf32, #tpu.memory_space<vmem>>, vector<2x128xf32>,
    %453 = arith.truncf %410 : vector<2x32xf32> to vector<2x32xbf16>
    %c0_147 = arith.constant 0 : index
    %c32_148 = arith.constant 32 : index
    %c0_149 = arith.constant 0 : index
    %454 = vector.load %arg2[%c0_147, %c32_148, %c0_149] : memref<2x64x128xbf16, #tpu.memory_space<vmem>>, vector<1x32x128xbf16>
    %455 = vector.shape_cast %454 : vector<1x32x128xbf16> to vector<32x128xbf16>
    %cst_150 = arith.constant dense<0.000000e+00> : vector<2x128xf32>
    %456 = tpu.matmul %453, %455, %cst_150 {dimension_numbers = #tpu.dot_dimension_numbers<[1], [0], [0], [1], [0, 0, 1, 1], [], []>} : vector<2x32xbf16>, vector<32x128xbf16>, vector<2x128xf32> -> vector<2x128xf32>
    %457 = vector.extract_strided_slice %10 {offsets = [12, 0], sizes = [2, 128], strides = [1, 1]} : vector<18x128xf32> to vector<2x128xf32>
    %458 = arith.addf %457, %456 : vector<2x128xf32>
    %459 = vector.extract_strided_slice %458 {offsets = [0, 0], sizes = [2, 32], strides = [1, 1]} : vector<2x128xf32> to vector<2x32xf32>
    %460 = arith.negf %459 : vector<2x32xf32>
    %461 = math.exp %460 : vector<2x32xf32>
    %cst_151 = arith.constant 1.000000e+00 : f32
    %462 = vector.broadcast %cst_151 : f32 to vector<2x32xf32>
    %463 = arith.addf %462, %461 : vector<2x32xf32>
    %464 = arith.divf %462, %463 : vector<2x32xf32>
    %465 = vector.extract_strided_slice %458 {offsets = [0, 32], sizes = [2, 32], strides = [1, 1]} : vector<2x128xf32> to vector<2x32xf32>
    %466 = arith.negf %465 : vector<2x32xf32>
    %467 = math.exp %466 : vector<2x32xf32>
    %cst_152 = arith.constant 1.000000e+00 : f32
    %468 = vector.broadcast %cst_152 : f32 to vector<2x32xf32>
    %469 = arith.addf %468, %467 : vector<2x32xf32>
    %470 = arith.divf %468, %469 : vector<2x32xf32>
    %471 = vector.extract_strided_slice %458 {offsets = [0, 64], sizes = [2, 32], strides = [1, 1]} : vector<2x128xf32> to vector<2x32xf32>
    %472 = math.tanh %471 : vector<2x32xf32>
    %473 = vector.extract_strided_slice %458 {offsets = [0, 96], sizes = [2, 32], strides = [1, 1]} : vector<2x128xf32> to vector<2x32xf32>
    %474 = arith.negf %473 : vector<2x32xf32>
    %475 = math.exp %474 : vector<2x32xf32>
    %cst_153 = arith.constant 1.000000e+00 : f32
    %476 = vector.broadcast %cst_153 : f32 to vector<2x32xf32>
    %477 = arith.addf %476, %475 : vector<2x32xf32>
    %478 = arith.divf %476, %477 : vector<2x32xf32>
    %479 = arith.mulf %470, %408 : vector<2x32xf32>
    %480 = arith.mulf %464, %472 : vector<2x32xf32>
    %481 = arith.addf %479, %480 : vector<2x32xf32>
    %482 = math.tanh %481 : vector<2x32xf32>
    %483 = arith.mulf %478, %482 : vector<2x32xf32>
    %484 = arith.truncf %483 : vector<2x32xf32> to vector<2x32xbf16>
    %485 = arith.truncf %446 : vector<2x32xf32> to vector<2x32xbf16>
    %c1_154 = arith.constant 1 : index
    %c32_155 = arith.constant 32 : index
    %c0_156 = arith.constant 0 : index
    %486 = vector.load %arg2[%c1_154, %c32_155, %c0_156] : memref<2x64x128xbf16, #tpu.memory_space<vmem>>, vector<1x32x128xbf16>
    %487 = vector.shape_cast %486 : vector<1x32x128xbf16> to vector<32x128xbf16>
    %cst_157 = arith.constant dense<0.000000e+00> : vector<2x128xf32>
    %488 = tpu.matmul %485, %487, %cst_157 {dimension_numbers = #tpu.dot_dimension_numbers<[1], [0], [0], [1], [0, 0, 1, 1], [], []>} : vector<2x32xbf16>, vector<32x128xbf16>, vector<2x128xf32> -> vector<2x128xf32>
    %c1_158 = arith.constant 1 : index
    %c0_159 = arith.constant 0 : index
    %c0_160 = arith.constant 0 : index
    %489 = vector.load %arg2[%c1_158, %c0_159, %c0_160] : memref<2x64x128xbf16, #tpu.memory_space<vmem>>, vector<1x32x128xbf16>
    %490 = vector.shape_cast %489 : vector<1x32x128xbf16> to vector<32x128xbf16>
    %cst_161 = arith.constant dense<0.000000e+00> : vector<2x128xf32>
    %491 = tpu.matmul %484, %490, %cst_161 {dimension_numbers = #tpu.dot_dimension_numbers<[1], [0], [0], [1], [0, 0, 1, 1], [], []>} : vector<2x32xbf16>, vector<32x128xbf16>, vector<2x128xf32> -> vector<2x128xf32>
    %492 = arith.addf %491, %488 : vector<2x128xf32>
    %493 = vector.broadcast %3 : vector<1x128xf32> to vector<2x128xf32>
    %494 = arith.addf %492, %493 : vector<2x128xf32>
    %495 = vector.extract_strided_slice %494 {offsets = [0, 0], sizes = [2, 32], strides = [1, 1]} : vector<2x128xf32> to vector<2x32xf32>
    %496 = arith.negf %495 : vector<2x32xf32>
    %497 = math.exp %496 : vector<2x32xf32>
    %cst_162 = arith.constant 1.000000e+00 : f32
    %498 = vector.broadcast %cst_162 : f32 to vector<2x32xf32>
    %499 = arith.addf %498, %497 : vector<2x32xf32>
    %500 = arith.divf %498, %499 : vector<2x32xf32>
    %501 = vector.extract_strided_slice %494 {offsets = [0, 32], sizes = [2, 32], strides = [1, 1]} : vector<2x128xf32> to vector<2x32xf32>
    %502 = arith.negf %501 : vector<2x32xf32>
    %503 = math.exp %502 : vector<2x32xf32>
    %cst_163 = arith.constant 1.000000e+00 : f32
    %504 = vector.broadcast %cst_163 : f32 to vector<2x32xf32>
    %505 = arith.addf %504, %503 : vector<2x32xf32>
    %506 = arith.divf %504, %505 : vector<2x32xf32>
    %507 = vector.extract_strided_slice %494 {offsets = [0, 64], sizes = [2, 32], strides = [1, 1]} : vector<2x128xf32> to vector<2x32xf32>
    %508 = math.tanh %507 : vector<2x32xf32>
    %509 = vector.extract_strided_slice %494 {offsets = [0, 96], sizes = [2, 32], strides = [1, 1]} : vector<2x128xf32> to vector<2x32xf32>
    %510 = arith.negf %509 : vector<2x32xf32>
    %511 = math.exp %510 : vector<2x32xf32>
    %cst_164 = arith.constant 1.000000e+00 : f32
    %512 = vector.broadcast %cst_164 : f32 to vector<2x32xf32>
    %513 = arith.addf %512, %511 : vector<2x32xf32>
    %514 = arith.divf %512, %513 : vector<2x32xf32>
    %515 = arith.mulf %506, %444 : vector<2x32xf32>
    %516 = arith.mulf %500, %508 : vector<2x32xf32>
    %517 = arith.addf %515, %516 : vector<2x32xf32>
    %518 = math.tanh %517 : vector<2x32xf32>
    %519 = arith.mulf %514, %518 : vector<2x32xf32>
    %520 = arith.truncf %519 : vector<2x32xf32> to vector<2x32xbf16>
    %c0_165 = arith.constant 0 : index
    %c0_166 = arith.constant 0 : index
    %521 = vector.load %arg4[%c0_165, %c0_166] : memref<32x128xbf16, #tpu.memory_space<vmem>>, vector<32x128xbf16>
    %cst_167 = arith.constant dense<0.000000e+00> : vector<2x128xf32>
    %522 = tpu.matmul %520, %521, %cst_167 {dimension_numbers = #tpu.dot_dimension_numbers<[1], [0], [0], [1], [0, 0, 1, 1], [], []>} : vector<2x32xbf16>, vector<32x128xbf16>, vector<2x128xf32> -> vector<2x128xf32>
    %523 = vector.broadcast %4 : vector<1x128xf32> to vector<2x128xf32>
    %524 = arith.addf %522, %523 : vector<2x128xf32>
    %c12 = arith.constant 12 : index
    %c0_168 = arith.constant 0 : index
    %525 = vector.load %arg6[%c12, %c0_168] : memref<18x128xf32, #tpu.memory_space<vmem>>, vector<2x128xf32>
    tpu.vector_store %arg6[%c12, %c0_168], %524 {strides = array<i32>} : memref<18x128xf32, #tpu.memory_space<vmem>>, vector<2x128xf32>,
    %526 = arith.truncf %483 : vector<2x32xf32> to vector<2x32xbf16>
    %c0_169 = arith.constant 0 : index
    %c32_170 = arith.constant 32 : index
    %c0_171 = arith.constant 0 : index
    %527 = vector.load %arg2[%c0_169, %c32_170, %c0_171] : memref<2x64x128xbf16, #tpu.memory_space<vmem>>, vector<1x32x128xbf16>
    %528 = vector.shape_cast %527 : vector<1x32x128xbf16> to vector<32x128xbf16>
    %cst_172 = arith.constant dense<0.000000e+00> : vector<2x128xf32>
    %529 = tpu.matmul %526, %528, %cst_172 {dimension_numbers = #tpu.dot_dimension_numbers<[1], [0], [0], [1], [0, 0, 1, 1], [], []>} : vector<2x32xbf16>, vector<32x128xbf16>, vector<2x128xf32> -> vector<2x128xf32>
    %530 = vector.extract_strided_slice %10 {offsets = [14, 0], sizes = [2, 128], strides = [1, 1]} : vector<18x128xf32> to vector<2x128xf32>
    %531 = arith.addf %530, %529 : vector<2x128xf32>
    %532 = vector.extract_strided_slice %531 {offsets = [0, 0], sizes = [2, 32], strides = [1, 1]} : vector<2x128xf32> to vector<2x32xf32>
    %533 = arith.negf %532 : vector<2x32xf32>
    %534 = math.exp %533 : vector<2x32xf32>
    %cst_173 = arith.constant 1.000000e+00 : f32
    %535 = vector.broadcast %cst_173 : f32 to vector<2x32xf32>
    %536 = arith.addf %535, %534 : vector<2x32xf32>
    %537 = arith.divf %535, %536 : vector<2x32xf32>
    %538 = vector.extract_strided_slice %531 {offsets = [0, 32], sizes = [2, 32], strides = [1, 1]} : vector<2x128xf32> to vector<2x32xf32>
    %539 = arith.negf %538 : vector<2x32xf32>
    %540 = math.exp %539 : vector<2x32xf32>
    %cst_174 = arith.constant 1.000000e+00 : f32
    %541 = vector.broadcast %cst_174 : f32 to vector<2x32xf32>
    %542 = arith.addf %541, %540 : vector<2x32xf32>
    %543 = arith.divf %541, %542 : vector<2x32xf32>
    %544 = vector.extract_strided_slice %531 {offsets = [0, 64], sizes = [2, 32], strides = [1, 1]} : vector<2x128xf32> to vector<2x32xf32>
    %545 = math.tanh %544 : vector<2x32xf32>
    %546 = vector.extract_strided_slice %531 {offsets = [0, 96], sizes = [2, 32], strides = [1, 1]} : vector<2x128xf32> to vector<2x32xf32>
    %547 = arith.negf %546 : vector<2x32xf32>
    %548 = math.exp %547 : vector<2x32xf32>
    %cst_175 = arith.constant 1.000000e+00 : f32
    %549 = vector.broadcast %cst_175 : f32 to vector<2x32xf32>
    %550 = arith.addf %549, %548 : vector<2x32xf32>
    %551 = arith.divf %549, %550 : vector<2x32xf32>
    %552 = arith.mulf %543, %481 : vector<2x32xf32>
    %553 = arith.mulf %537, %545 : vector<2x32xf32>
    %554 = arith.addf %552, %553 : vector<2x32xf32>
    %555 = math.tanh %554 : vector<2x32xf32>
    %556 = arith.mulf %551, %555 : vector<2x32xf32>
    %557 = arith.truncf %556 : vector<2x32xf32> to vector<2x32xbf16>
    %558 = arith.truncf %519 : vector<2x32xf32> to vector<2x32xbf16>
    %c1_176 = arith.constant 1 : index
    %c32_177 = arith.constant 32 : index
    %c0_178 = arith.constant 0 : index
    %559 = vector.load %arg2[%c1_176, %c32_177, %c0_178] : memref<2x64x128xbf16, #tpu.memory_space<vmem>>, vector<1x32x128xbf16>
    %560 = vector.shape_cast %559 : vector<1x32x128xbf16> to vector<32x128xbf16>
    %cst_179 = arith.constant dense<0.000000e+00> : vector<2x128xf32>
    %561 = tpu.matmul %558, %560, %cst_179 {dimension_numbers = #tpu.dot_dimension_numbers<[1], [0], [0], [1], [0, 0, 1, 1], [], []>} : vector<2x32xbf16>, vector<32x128xbf16>, vector<2x128xf32> -> vector<2x128xf32>
    %c1_180 = arith.constant 1 : index
    %c0_181 = arith.constant 0 : index
    %c0_182 = arith.constant 0 : index
    %562 = vector.load %arg2[%c1_180, %c0_181, %c0_182] : memref<2x64x128xbf16, #tpu.memory_space<vmem>>, vector<1x32x128xbf16>
    %563 = vector.shape_cast %562 : vector<1x32x128xbf16> to vector<32x128xbf16>
    %cst_183 = arith.constant dense<0.000000e+00> : vector<2x128xf32>
    %564 = tpu.matmul %557, %563, %cst_183 {dimension_numbers = #tpu.dot_dimension_numbers<[1], [0], [0], [1], [0, 0, 1, 1], [], []>} : vector<2x32xbf16>, vector<32x128xbf16>, vector<2x128xf32> -> vector<2x128xf32>
    %565 = arith.addf %564, %561 : vector<2x128xf32>
    %566 = vector.broadcast %3 : vector<1x128xf32> to vector<2x128xf32>
    %567 = arith.addf %565, %566 : vector<2x128xf32>
    %568 = vector.extract_strided_slice %567 {offsets = [0, 0], sizes = [2, 32], strides = [1, 1]} : vector<2x128xf32> to vector<2x32xf32>
    %569 = arith.negf %568 : vector<2x32xf32>
    %570 = math.exp %569 : vector<2x32xf32>
    %cst_184 = arith.constant 1.000000e+00 : f32
    %571 = vector.broadcast %cst_184 : f32 to vector<2x32xf32>
    %572 = arith.addf %571, %570 : vector<2x32xf32>
    %573 = arith.divf %571, %572 : vector<2x32xf32>
    %574 = vector.extract_strided_slice %567 {offsets = [0, 32], sizes = [2, 32], strides = [1, 1]} : vector<2x128xf32> to vector<2x32xf32>
    %575 = arith.negf %574 : vector<2x32xf32>
    %576 = math.exp %575 : vector<2x32xf32>
    %cst_185 = arith.constant 1.000000e+00 : f32
    %577 = vector.broadcast %cst_185 : f32 to vector<2x32xf32>
    %578 = arith.addf %577, %576 : vector<2x32xf32>
    %579 = arith.divf %577, %578 : vector<2x32xf32>
    %580 = vector.extract_strided_slice %567 {offsets = [0, 64], sizes = [2, 32], strides = [1, 1]} : vector<2x128xf32> to vector<2x32xf32>
    %581 = math.tanh %580 : vector<2x32xf32>
    %582 = vector.extract_strided_slice %567 {offsets = [0, 96], sizes = [2, 32], strides = [1, 1]} : vector<2x128xf32> to vector<2x32xf32>
    %583 = arith.negf %582 : vector<2x32xf32>
    %584 = math.exp %583 : vector<2x32xf32>
    %cst_186 = arith.constant 1.000000e+00 : f32
    %585 = vector.broadcast %cst_186 : f32 to vector<2x32xf32>
    %586 = arith.addf %585, %584 : vector<2x32xf32>
    %587 = arith.divf %585, %586 : vector<2x32xf32>
    %588 = arith.mulf %579, %517 : vector<2x32xf32>
    %589 = arith.mulf %573, %581 : vector<2x32xf32>
    %590 = arith.addf %588, %589 : vector<2x32xf32>
    %591 = math.tanh %590 : vector<2x32xf32>
    %592 = arith.mulf %587, %591 : vector<2x32xf32>
    %593 = arith.truncf %592 : vector<2x32xf32> to vector<2x32xbf16>
    %c0_187 = arith.constant 0 : index
    %c0_188 = arith.constant 0 : index
    %594 = vector.load %arg4[%c0_187, %c0_188] : memref<32x128xbf16, #tpu.memory_space<vmem>>, vector<32x128xbf16>
    %cst_189 = arith.constant dense<0.000000e+00> : vector<2x128xf32>
    %595 = tpu.matmul %593, %594, %cst_189 {dimension_numbers = #tpu.dot_dimension_numbers<[1], [0], [0], [1], [0, 0, 1, 1], [], []>} : vector<2x32xbf16>, vector<32x128xbf16>, vector<2x128xf32> -> vector<2x128xf32>
    %596 = vector.broadcast %4 : vector<1x128xf32> to vector<2x128xf32>
    %597 = arith.addf %595, %596 : vector<2x128xf32>
    %c14 = arith.constant 14 : index
    %c0_190 = arith.constant 0 : index
    %598 = vector.load %arg6[%c14, %c0_190] : memref<18x128xf32, #tpu.memory_space<vmem>>, vector<2x128xf32>
    tpu.vector_store %arg6[%c14, %c0_190], %597 {strides = array<i32>} : memref<18x128xf32, #tpu.memory_space<vmem>>, vector<2x128xf32>,
    %599 = arith.truncf %556 : vector<2x32xf32> to vector<2x32xbf16>
    %c0_191 = arith.constant 0 : index
    %c32_192 = arith.constant 32 : index
    %c0_193 = arith.constant 0 : index
    %600 = vector.load %arg2[%c0_191, %c32_192, %c0_193] : memref<2x64x128xbf16, #tpu.memory_space<vmem>>, vector<1x32x128xbf16>
    %601 = vector.shape_cast %600 : vector<1x32x128xbf16> to vector<32x128xbf16>
    %cst_194 = arith.constant dense<0.000000e+00> : vector<2x128xf32>
    %602 = tpu.matmul %599, %601, %cst_194 {dimension_numbers = #tpu.dot_dimension_numbers<[1], [0], [0], [1], [0, 0, 1, 1], [], []>} : vector<2x32xbf16>, vector<32x128xbf16>, vector<2x128xf32> -> vector<2x128xf32>
    %603 = vector.extract_strided_slice %10 {offsets = [16, 0], sizes = [2, 128], strides = [1, 1]} : vector<18x128xf32> to vector<2x128xf32>
    %604 = arith.addf %603, %602 : vector<2x128xf32>
    %605 = vector.extract_strided_slice %604 {offsets = [0, 0], sizes = [2, 32], strides = [1, 1]} : vector<2x128xf32> to vector<2x32xf32>
    %606 = arith.negf %605 : vector<2x32xf32>
    %607 = math.exp %606 : vector<2x32xf32>
    %cst_195 = arith.constant 1.000000e+00 : f32
    %608 = vector.broadcast %cst_195 : f32 to vector<2x32xf32>
    %609 = arith.addf %608, %607 : vector<2x32xf32>
    %610 = arith.divf %608, %609 : vector<2x32xf32>
    %611 = vector.extract_strided_slice %604 {offsets = [0, 32], sizes = [2, 32], strides = [1, 1]} : vector<2x128xf32> to vector<2x32xf32>
    %612 = arith.negf %611 : vector<2x32xf32>
    %613 = math.exp %612 : vector<2x32xf32>
    %cst_196 = arith.constant 1.000000e+00 : f32
    %614 = vector.broadcast %cst_196 : f32 to vector<2x32xf32>
    %615 = arith.addf %614, %613 : vector<2x32xf32>
    %616 = arith.divf %614, %615 : vector<2x32xf32>
    %617 = vector.extract_strided_slice %604 {offsets = [0, 64], sizes = [2, 32], strides = [1, 1]} : vector<2x128xf32> to vector<2x32xf32>
    %618 = math.tanh %617 : vector<2x32xf32>
    %619 = vector.extract_strided_slice %604 {offsets = [0, 96], sizes = [2, 32], strides = [1, 1]} : vector<2x128xf32> to vector<2x32xf32>
    %620 = arith.negf %619 : vector<2x32xf32>
    %621 = math.exp %620 : vector<2x32xf32>
    %cst_197 = arith.constant 1.000000e+00 : f32
    %622 = vector.broadcast %cst_197 : f32 to vector<2x32xf32>
    %623 = arith.addf %622, %621 : vector<2x32xf32>
    %624 = arith.divf %622, %623 : vector<2x32xf32>
    %625 = arith.mulf %616, %554 : vector<2x32xf32>
    %626 = arith.mulf %610, %618 : vector<2x32xf32>
    %627 = arith.addf %625, %626 : vector<2x32xf32>
    %628 = math.tanh %627 : vector<2x32xf32>
    %629 = arith.mulf %624, %628 : vector<2x32xf32>
    %630 = arith.truncf %629 : vector<2x32xf32> to vector<2x32xbf16>
    %631 = arith.truncf %592 : vector<2x32xf32> to vector<2x32xbf16>
    %c1_198 = arith.constant 1 : index
    %c32_199 = arith.constant 32 : index
    %c0_200 = arith.constant 0 : index
    %632 = vector.load %arg2[%c1_198, %c32_199, %c0_200] : memref<2x64x128xbf16, #tpu.memory_space<vmem>>, vector<1x32x128xbf16>
    %633 = vector.shape_cast %632 : vector<1x32x128xbf16> to vector<32x128xbf16>
    %cst_201 = arith.constant dense<0.000000e+00> : vector<2x128xf32>
    %634 = tpu.matmul %631, %633, %cst_201 {dimension_numbers = #tpu.dot_dimension_numbers<[1], [0], [0], [1], [0, 0, 1, 1], [], []>} : vector<2x32xbf16>, vector<32x128xbf16>, vector<2x128xf32> -> vector<2x128xf32>
    %c1_202 = arith.constant 1 : index
    %c0_203 = arith.constant 0 : index
    %c0_204 = arith.constant 0 : index
    %635 = vector.load %arg2[%c1_202, %c0_203, %c0_204] : memref<2x64x128xbf16, #tpu.memory_space<vmem>>, vector<1x32x128xbf16>
    %636 = vector.shape_cast %635 : vector<1x32x128xbf16> to vector<32x128xbf16>
    %cst_205 = arith.constant dense<0.000000e+00> : vector<2x128xf32>
    %637 = tpu.matmul %630, %636, %cst_205 {dimension_numbers = #tpu.dot_dimension_numbers<[1], [0], [0], [1], [0, 0, 1, 1], [], []>} : vector<2x32xbf16>, vector<32x128xbf16>, vector<2x128xf32> -> vector<2x128xf32>
    %638 = arith.addf %637, %634 : vector<2x128xf32>
    %639 = vector.broadcast %3 : vector<1x128xf32> to vector<2x128xf32>
    %640 = arith.addf %638, %639 : vector<2x128xf32>
    %641 = vector.extract_strided_slice %640 {offsets = [0, 0], sizes = [2, 32], strides = [1, 1]} : vector<2x128xf32> to vector<2x32xf32>
    %642 = arith.negf %641 : vector<2x32xf32>
    %643 = math.exp %642 : vector<2x32xf32>
    %cst_206 = arith.constant 1.000000e+00 : f32
    %644 = vector.broadcast %cst_206 : f32 to vector<2x32xf32>
    %645 = arith.addf %644, %643 : vector<2x32xf32>
    %646 = arith.divf %644, %645 : vector<2x32xf32>
    %647 = vector.extract_strided_slice %640 {offsets = [0, 32], sizes = [2, 32], strides = [1, 1]} : vector<2x128xf32> to vector<2x32xf32>
    %648 = arith.negf %647 : vector<2x32xf32>
    %649 = math.exp %648 : vector<2x32xf32>
    %cst_207 = arith.constant 1.000000e+00 : f32
    %650 = vector.broadcast %cst_207 : f32 to vector<2x32xf32>
    %651 = arith.addf %650, %649 : vector<2x32xf32>
    %652 = arith.divf %650, %651 : vector<2x32xf32>
    %653 = vector.extract_strided_slice %640 {offsets = [0, 64], sizes = [2, 32], strides = [1, 1]} : vector<2x128xf32> to vector<2x32xf32>
    %654 = math.tanh %653 : vector<2x32xf32>
    %655 = vector.extract_strided_slice %640 {offsets = [0, 96], sizes = [2, 32], strides = [1, 1]} : vector<2x128xf32> to vector<2x32xf32>
    %656 = arith.negf %655 : vector<2x32xf32>
    %657 = math.exp %656 : vector<2x32xf32>
    %cst_208 = arith.constant 1.000000e+00 : f32
    %658 = vector.broadcast %cst_208 : f32 to vector<2x32xf32>
    %659 = arith.addf %658, %657 : vector<2x32xf32>
    %660 = arith.divf %658, %659 : vector<2x32xf32>
    %661 = arith.mulf %652, %590 : vector<2x32xf32>
    %662 = arith.mulf %646, %654 : vector<2x32xf32>
    %663 = arith.addf %661, %662 : vector<2x32xf32>
    %664 = math.tanh %663 : vector<2x32xf32>
    %665 = arith.mulf %660, %664 : vector<2x32xf32>
    %666 = arith.truncf %665 : vector<2x32xf32> to vector<2x32xbf16>
    %c0_209 = arith.constant 0 : index
    %c0_210 = arith.constant 0 : index
    %667 = vector.load %arg4[%c0_209, %c0_210] : memref<32x128xbf16, #tpu.memory_space<vmem>>, vector<32x128xbf16>
    %cst_211 = arith.constant dense<0.000000e+00> : vector<2x128xf32>
    %668 = tpu.matmul %666, %667, %cst_211 {dimension_numbers = #tpu.dot_dimension_numbers<[1], [0], [0], [1], [0, 0, 1, 1], [], []>} : vector<2x32xbf16>, vector<32x128xbf16>, vector<2x128xf32> -> vector<2x128xf32>
    %669 = vector.broadcast %4 : vector<1x128xf32> to vector<2x128xf32>
    %670 = arith.addf %668, %669 : vector<2x128xf32>
    %c16 = arith.constant 16 : index
    %c0_212 = arith.constant 0 : index
    %671 = vector.load %arg6[%c16, %c0_212] : memref<18x128xf32, #tpu.memory_space<vmem>>, vector<2x128xf32>
    tpu.vector_store %arg6[%c16, %c0_212], %670 {strides = array<i32>} : memref<18x128xf32, #tpu.memory_space<vmem>>, vector<2x128xf32>,
    return
  }
  func.func @transform_0(%arg0: i32) -> (i32, i32) {
    %c0_i32 = arith.constant 0 : i32
    %c0_i32_0 = arith.constant 0 : i32
    %c0_i32_1 = arith.constant 0 : i32
    return %c0_i32, %c0_i32_0 : i32, i32
  }
  func.func @transform_1(%arg0: i32) -> (i32, i32, i32) {
    %c0_i32 = arith.constant 0 : i32
    %c0_i32_0 = arith.constant 0 : i32
    %c0_i32_1 = arith.constant 0 : i32
    %c0_i32_2 = arith.constant 0 : i32
    return %c0_i32, %c0_i32_0, %c0_i32_1 : i32, i32, i32
  }
  func.func @transform_2(%arg0: i32) -> (i32, i32, i32) {
    %c0_i32 = arith.constant 0 : i32
    %c0_i32_0 = arith.constant 0 : i32
    %c0_i32_1 = arith.constant 0 : i32
    %c0_i32_2 = arith.constant 0 : i32
    return %c0_i32, %c0_i32_0, %c0_i32_1 : i32, i32, i32
  }
  func.func @transform_3(%arg0: i32) -> (i32, i32) {
    %c0_i32 = arith.constant 0 : i32
    %c0_i32_0 = arith.constant 0 : i32
    %c0_i32_1 = arith.constant 0 : i32
    return %c0_i32, %c0_i32_0 : i32, i32
  }
  func.func @transform_4(%arg0: i32) -> (i32, i32) {
    %c0_i32 = arith.constant 0 : i32
    %c0_i32_0 = arith.constant 0 : i32
    %c0_i32_1 = arith.constant 0 : i32
    return %c0_i32, %c0_i32_0 : i32, i32
  }
  func.func @transform_5(%arg0: i32) -> (i32, i32) {
    %c0_i32 = arith.constant 0 : i32
    %c0_i32_0 = arith.constant 0 : i32
    %c0_i32_1 = arith.constant 0 : i32
    return %c0_i32, %c0_i32_0 : i32, i32
  }
}

</mosaic_0001>

<bundles_post_ra>
// kernel: seq2seq_forward.1
= control target key start
LH: loop header
LB: loop body
LE: loop exit
PB: predicated region body
PF: predicated region fallthrough
CT: control target
= control target key end

     0   :  { %v3663_v1 = vmov 0.0   ;;  %vm59_vm0 = vcmask 261120   ;;  %vm3664_vm1 = vmmov 0   ;;  %v3665_v7 = vmov 0   ;;  %s4313_s0 = inlined_call_operand.vmem [shape: bf16[18,32], index: 0, kind: input, shape index: {}]   ;;  %s4314_s1 = inlined_call_operand.vmem [shape: bf16[2,64,128], index: 1, kind: input, shape index: {}]   ;;  %s4315_s2 = inlined_call_operand.vmem [shape: f32[2,1,128], index: 2, kind: input, shape index: {}]   ;;  %s4316_s3 = inlined_call_operand.vmem [shape: bf16[32,128], index: 3, kind: input, shape index: {}]   ;;  %s4317_s4 = inlined_call_operand.vmem [shape: f32[1,128], index: 4, kind: input, shape index: {}]   ;;  %s4318_s5 = inlined_call_operand.hbm [shape: f32[18,128], index: 5, kind: output, shape index: {}]  }
   0x1   :  { %v3417_v0 = vld [vmem:[%s4314_s1] sm:$0xff]   ;;  %3121 = vmatprep.subr.bf16.mxu1 %v3663_v1  ;;  %v3418_v2 = vld [vmem:[%s4314_s1 + $0x10] sm:$0xff]   ;;  %v3419_v3 = vld [vmem:[%s4314_s1 + $0x8] sm:$0xff]   ;;  %3125 = vmatprep.mubr.msk.bf16.mxu1 %vm3664_vm1, %v3663_v1 }
   0x2   :  { %3113 = vmatprep.subr.bf16.mxu0 %v3417_v0  ;;  %3122 = vmatpush3.bf16.msra.mxu1 %v3418_v2  ;;  %v3420_v4 = vld [vmem:[%s4314_s1 + $0x18] sm:$0xff]   ;;  %v3421_v5 = vld [vmem:[%s4313_s0] sm:$0xff]   ;;  %v3422_v6 = vld [vmem:[%s4313_s0 + $0x8] ss:$0 sps:$4 sm:$0x11]  }
   0x3   :  { %3114 = vmatpush3.bf16.msra.mxu0 %v3417_v0  ;;  %3123 = vmatprep.subr.bf16.mxu1 %v3663_v1 }
   0x4   :  { %3115 = vmatprep.subr.bf16.mxu0 %v3419_v3  ;;  %3117 = vmatprep.mubr.msk.bf16.mxu0 %vm59_vm0, %v3421_v5 }
   0x6   :  { %3124 = vmatpush3.bf16.msra.mxu1 %v3420_v4 }
   0x7   :  { %3116 = vmatpush3.bf16.msra.mxu0 %v3419_v3  ;;  %3137 = vmatprep.subr.bf16.mxu1 %v3663_v1 }
   0x8   :  { %3129 = vmatprep.subr.bf16.mxu0 %v3663_v1 }
   0x9   :  { %3126 = vmatmul.mubr.bf16.vlgmr.msra.gmra.mrb[0].mxu1 %v3665_v7 }
   0xa   :  { %3118 = vmatmul.mubr.msk.bf16.vlgmr.msra.gmra.mrb[0].mxu0 %vm59_vm0, %v3422_v6  ;;  %3141 = vmatprep.mubr.msk.bf16.mxu1 %vm3664_vm1, %v3663_v1 }
   0xb   :  { %3133 = vmatprep.mubr.msk.bf16.mxu0 %vm3664_vm1, %v3663_v1 }
   0xc   :  { %10 = vsyncpa [#allocation3], 0  ;;  %v2796_v8 = vld [vmem:[%s4315_s2] ss:$0 sm:$0xff]  ;;  %s3666_s6 = smov 64   ;;  %s3667_s7 = smov 32  }
   0xd   :  { %v3423_v31 = vld [vmem:[%s4314_s1 + $0x20] sm:$0xff]   ;;  %v3424_v32 = vld [vmem:[%s4314_s1 + $0x30] sm:$0xff]   ;;  %v3425_v33 = vld [vmem:[%s4314_s1 + $0x28] sm:$0xff]   ;;  %s3668_s8 = smov [#allocation2]  }
   0xe   :  { %3138 = vmatpush3.bf16.msra.mxu1 %v3423_v31  ;;  %3130 = vmatpush3.bf16.msra.mxu0 %v3424_v32  ;;  %v3426_v34 = vld [vmem:[%s4314_s1 + $0x38] sm:$0xff]   ;;  %v3427_v43 = vld [vmem:[%s4314_s1 + $0x10] sm:$0xff]   ;;  %v3783_v46 = vld [vmem:[%s4315_s2 + $0x1] ss:$0 sm:$0xff]  ;;  %s2784_s9 = sshll.u32 %s3668_s8, 4  ;;  %s2785_s9 = int_to_ptr.vmem [resolvable:$true] %s2784_s9 }
   0xf   :  { %3139 = vmatprep.subr.bf16.mxu1 %v3663_v1  ;;  %3131 = vmatprep.subr.bf16.mxu0 %v3663_v1  ;;  %v3428_v45 = vld [vmem:[%s4314_s1 + $0x18] sm:$0xff]   ;;  %p3644_p1 = scmp.lt.s32.totalorder %s2785_s9, %s2785_s9 }
  0x12   :  { %3140 = vmatpush3.bf16.msra.mxu1 %v3425_v33  ;;  %3132 = vmatpush3.bf16.msra.mxu0 %v3426_v34  ;;  %v3431_v33 = vld [vmem:[%s4314_s1 + $0x30] sm:$0xff]  }
  0x13   :  { %3153 = vmatprep.subr.bf16.mxu1 %v3663_v1  ;;  %3145 = vmatprep.subr.bf16.mxu0 %v3663_v1 }
  0x15   :  { %3134 = vmatmul.mubr.bf16.vlgmr.msra.gmra.mrb[4].mxu0 %v3665_v7 }
  0x16   :  { %3149 = vmatprep.mubr.msk.bf16.mxu0 %vm3664_vm1, %v3663_v1 }
  0xdc   :  { %v167_v10 = vpop.f32.mrb[0].mxu1 }
  0xdd   :  { %v3119_v9 = vpop.f32.mrb[0].mxu0  ;;  %v3127_v13 = vpop.f32.mrb[1].mxu1 }
  0xde   :  { %v3734_v11 = vadd.f32 %v3119_v9, %v2796_v8  ;;  %v100_v12 = vpop.f32.mrb[1].mxu0  ;;  %v170_v16 = vpop.f32.mrb[2].mxu1 }
  0xdf   :  { %v3736_v14 = vadd.f32 %v2796_v8, %v100_v12  ;;  %v3120_v15 = vpop.f32.mrb[2].mxu0  ;;  %v3128_v18 = vpop.f32.mrb[3].mxu1 }
  0xe0   :  { %v103_v17 = vpop.f32.mrb[3].mxu0 }
  0xe1   :  { %v173_v19 = vadd.f32 %v167_v10, %v3736_v14  ;;  %v3739_v20 = vadd.f32 %v2796_v8, %v103_v17 }
  0xe3   :  { %3493 = vtanh.f32 %v173_v19  ;;  %v2805_v22 = vmul.f32 -1.442695, %v173_v19 }
  0xe5   :  { %3495 = vpow2.f32 %v2805_v22  ;;  %v3430_v22 = vld [vmem:[%s4316_s3 + $0x8] sm:$0xff]  }
  0xe8   :  { %v250_v39 = vpop.f32.mrb[4].mxu0 }
  0xe9   :  { %v3135_v40 = vpop.f32.mrb[5].mxu0 }
  0xea   :  { %v253_v41 = vpop.f32.mrb[6].mxu0 }
  0xeb   :  { %v3136_v42 = vpop.f32.mrb[7].mxu0 }
  0xed   :  { %v3494_v21 = vpop.eup %3493 }
  0xee   :  { %183 = vrot.lane.b32.xlu0 %v3494_v21, %s3666_s6  ;;  %v3429_v21 = vld [vmem:[%s4316_s3] sm:$0xff]  }
  0xef   :  { %v3496_v23 = vpop.eup %3495  ;;  %3146 = vmatpush3.bf16.msra.mxu0 %v3429_v21 }
  0xf0   :  { %v177_v24 = vadd.f32 1.0, %v3496_v23  ;;  %3147 = vmatprep.subr.bf16.mxu0 %v3663_v1 }
  0xf2   :  { %3497 = vrcp.f32 %v177_v24  ;;  %v3432_v24 = vld [vmem:[%s4314_s1 + $0x20] sm:$0xff]  }
  0xf3   :  { %3148 = vmatpush3.bf16.msra.mxu0 %v3430_v22 }
  0xf4   :  { %3161 = vmatprep.subr.bf16.mxu0 %v3663_v1 }
  0xfc   :  { %v3498_v25 = vpop.eup %3497 }
  0xfd   :  { %v181_v28 = vmul.f32 0.0, %v3498_v25 }
 0x160   :  { %v184_v26 = vpop.permute.xlu0 %183 }
 0x161   :  { %v186_v27 = vmul.f32 %v3498_v25, %v184_v26 }
 0x163   :  { %188 = vrot.lane.b32.xlu0 %v186_v27, %s3667_s7 }
 0x1d5   :  { %v189_v29 = vpop.permute.xlu0 %188 }
 0x1d6   :  { %v3743_v30 = vadd.f32 %v189_v29, %v181_v28 }
 0x1d8   :  { %3499 = vtanh.f32 %v3743_v30  ;;  %v487_v15 = vrot.slane %v3743_v30, 6 }
 0x1e2   :  { %v3500_v35 = vpop.eup %3499 }
 0x1e3   :  { %194 = vrot.lane.b32.xlu1 %v3500_v35, %s3666_s6  ;;  %v3433_v35 = vld [vmem:[%s4314_s1 + $0x38] sm:$0xff]  }
 0x255   :  { %v195_v36 = vpop.permute.xlu1 %194 }
 0x256   :  { %v197_v37 = vmul.f32 %v3498_v25, %v195_v36  ;;  %v3434_v25 = vld [vmem:[%s4314_s1 + $0x28] sm:$0xff]   ;;  %v3435_v36 = vld [vmem:[%s4314_s1 + $0x10] sm:$0xff]  }
 0x258   :  { %v198_v38 = vpack.c.bf16 %v197_v37, %v197_v37 }
 0x25a   :  { %261 = vrot.lane.b32.xlu1 %v198_v38, %s3667_s7  ;;  %v3436_v38 = vld [vmem:[%s4314_s1 + $0x18] sm:$0xff]  }
 0x2cc   :  { %v262_v44 = vpop.permute.xlu1 %261 }
 0x2cd   :  { %3142 = vmatmul.mubr.msk.bf16.vlgmr.msra.gmra.mrb[4].mxu1 %vm59_vm0, %v262_v44 }
 0x2ce   :  { %3154 = vmatpush3.bf16.msra.mxu1 %v3427_v43  ;;  %3157 = vmatprep.mubr.msk.bf16.mxu1 %vm3664_vm1, %v3663_v1 }
 0x2cf   :  { %3155 = vmatprep.subr.bf16.mxu1 %v3663_v1 }
 0x2d2   :  { %3156 = vmatpush3.bf16.msra.mxu1 %v3428_v45 }
 0x2d3   :  { %3169 = vmatprep.subr.bf16.mxu1 %v3663_v1 }
 0x2d5   :  { %3158 = vmatmul.mubr.msk.bf16.vlgmr.msra.gmra.mrb[8].mxu1 %vm59_vm0, %v262_v44 }
 0x2d6   :  { %3173 = vmatprep.mubr.msk.bf16.mxu1 %vm3664_vm1, %v3663_v1  ;;  %3170 = vmatpush3.bf16.msra.mxu1 %v3432_v24 }
 0x2d7   :  { %3171 = vmatprep.subr.bf16.mxu1 %v3663_v1 }
 0x2da   :  { %3172 = vmatpush3.bf16.msra.mxu1 %v3434_v25 }
 0x2db   :  { %3185 = vmatprep.subr.bf16.mxu1 %v3663_v1 }
 0x3a0   :  { %v312_v47 = vpop.f32.mrb[4].mxu1 }
 0x3a1   :  { %v313_v48 = vadd.f32 %v312_v47, %v250_v39  ;;  %v3143_v49 = vpop.f32.mrb[5].mxu1  ;;  %v3849_v39 = vld [vmem:[%s4317_s4] ss:$0 sm:$0xff] }
 0x3a2   :  { %v315_v50 = vpop.f32.mrb[6].mxu1 }
 0x3a3   :  { %v324_v51 = vadd.f32 %v3783_v46, %v313_v48  ;;  %v3144_v52 = vpop.f32.mrb[7].mxu1 }
 0x3a5   :  { %3501 = vtanh.f32 %v324_v51  ;;  %v2820_v61 = vmul.f32 -1.442695, %v324_v51 }
 0x3a8   :  { %v469_v53 = vpop.f32.mrb[8].mxu1 }
 0x3a9   :  { %v476_v54 = vrot.slane %v469_v53, 6  ;;  %v3159_v55 = vpop.f32.mrb[9].mxu1 }
 0x3aa   :  { %v472_v56 = vpop.f32.mrb[10].mxu1 }
 0x3ab   :  { %v478_v57 = vadd.f32 %v476_v54, %v3736_v14  ;;  %v3160_v58 = vpop.f32.mrb[11].mxu1 }
 0x3ad   :  { %3503 = vtanh.f32 %v478_v57  ;;  %v2828_v62 = vmul.f32 -1.442695, %v478_v57 }
 0x3ae   :  { %3505 = vpow2.f32 %v2820_v61 }
 0x3af   :  { %v3502_v59 = vpop.eup %3501  ;;  %3507 = vpow2.f32 %v2828_v62 }
 0x3b0   :  { %334 = vrot.lane.b32.xlu1 %v3502_v59, %s3666_s6 }
 0x3b7   :  { %v3504_v60 = vpop.eup %3503 }
 0x3b8   :  { %491 = vrot.lane.b32.xlu0 %v3504_v60, %s3666_s6  ;;  %v3506_v63 = vpop.eup %3505 }
 0x3b9   :  { %v328_v0 = vadd.f32 1.0, %v3506_v63  ;;  %v3508_v2 = vpop.eup %3507 }
 0x3ba   :  { %v482_v3 = vadd.f32 1.0, %v3508_v2 }
 0x3bb   :  { %3509 = vrcp.f32 %v328_v0 }
 0x3bc   :  { %3511 = vrcp.f32 %v482_v3 }
 0x3c5   :  { %v3510_v4 = vpop.eup %3509 }
 0x3c6   :  { %v3512_v7 = vpop.eup %3511  ;;  %v332_v10 = vmul.f32 0.0, %v3510_v4 }
 0x3c7   :  { %v489_v16 = vmul.f32 %v3512_v7, %v487_v15 }
 0x422   :  { %v335_v5 = vpop.permute.xlu1 %334 }
 0x423   :  { %v337_v6 = vmul.f32 %v3510_v4, %v335_v5 }
 0x425   :  { %339 = vrot.lane.b32.xlu1 %v337_v6, %s3667_s7 }
 0x42a   :  { %v492_v8 = vpop.permute.xlu0 %491 }
 0x42b   :  { %v494_v9 = vmul.f32 %v3512_v7, %v492_v8 }
 0x42d   :  { %496 = vrot.lane.b32.xlu0 %v494_v9, %s3667_s7 }
 0x497   :  { %v340_v12 = vpop.permute.xlu1 %339 }
 0x498   :  { %v3791_v13 = vadd.f32 %v340_v12, %v332_v10 }
 0x49a   :  { %3513 = vtanh.f32 %v3791_v13 }
 0x49f   :  { %v497_v17 = vpop.permute.xlu0 %496 }
 0x4a0   :  { %v3795_v18 = vadd.f32 %v497_v17, %v489_v16 }
 0x4a2   :  { %3515 = vtanh.f32 %v3795_v18  ;;  %v783_v21 = vrot.slane %v3795_v18, 6 }
 0x4a4   :  { %v3514_v19 = vpop.eup %3513 }
 0x4a5   :  { %345 = vrot.lane.b32.xlu1 %v3514_v19, %s3666_s6 }
 0x4ac   :  { %v3516_v23 = vpop.eup %3515 }
 0x4ad   :  { %502 = vrot.lane.b32.xlu0 %v3516_v23, %s3666_s6 }
 0x517   :  { %v346_v26 = vpop.permute.xlu1 %345 }
 0x518   :  { %v348_v27 = vmul.f32 %v3510_v4, %v346_v26  ;;  %v3438_v26 = vld [vmem:[%s4316_s3 + $0x8] sm:$0xff]  }
 0x51a   :  { %v349_v28 = vpack.c.bf16 %v348_v27, %v348_v27  ;;  %v3440_v27 = vld [vmem:[%s4314_s1 + $0x20] sm:$0xff]  }
 0x51c   :  { %361 = vrot.lane.b32.xlu0 %v349_v28, %s3667_s7  ;;  %v3442_v28 = vld [vmem:[%s4314_s1 + $0x28] sm:$0xff]  }
 0x51f   :  { %v503_v29 = vpop.permute.xlu0 %502 }
 0x520   :  { %v505_v30 = vmul.f32 %v3512_v7, %v503_v29 }
 0x522   :  { %v506_v31 = vpack.c.bf16 %v505_v30, %v505_v30 }
 0x524   :  { %v568_v32 = vrot.slane %v506_v31, 1 }
 0x526   :  { %569 = vrot.lane.b32.xlu1 %v568_v32, %s3667_s7 }
 0x58e   :  { %v362_v34 = vpop.permute.xlu0 %361 }
 0x58f   :  { %3150 = vmatmul.mubr.msk.bf16.vlgmr.msra.gmra.mrb[8].mxu0 %vm59_vm0, %v362_v34 }
 0x590   :  { %3162 = vmatpush3.bf16.msra.mxu0 %v3431_v33  ;;  %3165 = vmatprep.mubr.msk.bf16.mxu0 %vm3664_vm1, %v3663_v1 }
 0x591   :  { %3163 = vmatprep.subr.bf16.mxu0 %v3663_v1 }
 0x594   :  { %3164 = vmatpush3.bf16.msra.mxu0 %v3433_v35 }
 0x595   :  { %3177 = vmatprep.subr.bf16.mxu0 %v3663_v1 }
 0x597   :  { %3166 = vmatmul.mubr.msk.bf16.vlgmr.msra.gmra.mrb[12].mxu0 %vm59_vm0, %v362_v34 }
 0x598   :  { %v570_v37 = vpop.permute.xlu1 %569  ;;  %3181 = vmatprep.mubr.msk.bf16.mxu0 %vm3664_vm1, %v3663_v1 }
 0x599   :  { %3174 = vmatmul.mubr.msk.bf16.vlgmr.msra.gmra.mrb[12].mxu1 %vm59_vm0, %v570_v37 }
 0x59a   :  { %3186 = vmatpush3.bf16.msra.mxu1 %v3435_v36  ;;  %3189 = vmatprep.mubr.msk.bf16.mxu1 %vm3664_vm1, %v3663_v1  ;;  %v3439_v36 = vld [vmem:[%s4314_s1 + $0x30] sm:$0xff]  }
 0x59b   :  { %3187 = vmatprep.subr.bf16.mxu1 %v3663_v1 }
 0x59e   :  { %3188 = vmatpush3.bf16.msra.mxu1 %v3436_v38  ;;  %v3441_v38 = vld [vmem:[%s4314_s1 + $0x38] sm:$0xff]  }
 0x59f   :  { %3201 = vmatprep.subr.bf16.mxu1 %v3663_v1 }
 0x5a1   :  { %3190 = vmatmul.mubr.msk.bf16.vlgmr.msra.gmra.mrb[16].mxu1 %vm59_vm0, %v570_v37 }
 0x5a2   :  { %3205 = vmatprep.mubr.msk.bf16.mxu1 %vm3664_vm1, %v3663_v1  ;;  %3202 = vmatpush3.bf16.msra.mxu1 %v3440_v27 }
 0x5a3   :  { %3203 = vmatprep.subr.bf16.mxu1 %v3663_v1 }
 0x5a6   :  { %3204 = vmatpush3.bf16.msra.mxu1 %v3442_v28  ;;  %v3446_v28 = vld [vmem:[%s4316_s3 + $0x8] sm:$0xff]  }
 0x5a7   :  { %3217 = vmatprep.subr.bf16.mxu1 %v3663_v1 }
 0x662   :  { %v412_v40 = vpop.f32.mrb[8].mxu0 }
 0x663   :  { %v413_v41 = vadd.f32 %v3849_v39, %v412_v40  ;;  %v3151_v42 = vpop.f32.mrb[9].mxu0  ;;  %v3443_v40 = vld [vmem:[%s4314_s1 + $0x10] sm:$0xff]  }
 0x664   :  { %v415_v43 = vpop.f32.mrb[10].mxu0  ;;  %v3444_v42 = vld [vmem:[%s4314_s1 + $0x18] sm:$0xff]  }
 0x665   :  { %418 = vst [vmem:[#allocation2] sm:$0x3] %v413_v41  ;;  %v3152_v44 = vpop.f32.mrb[11].mxu0 }
 0x66a   :  { %v557_v45 = vpop.f32.mrb[12].mxu0 }
 0x66b   :  { %v3167_v47 = vpop.f32.mrb[13].mxu0 }
 0x66c   :  { %v560_v48 = vpop.f32.mrb[14].mxu0  ;;  %v620_v49 = vpop.f32.mrb[12].mxu1 }
 0x66d   :  { %v621_v50 = vadd.f32 %v620_v49, %v557_v45  ;;  %v3168_v51 = vpop.f32.mrb[15].mxu0  ;;  %v3175_v52 = vpop.f32.mrb[13].mxu1 }
 0x66e   :  { %v623_v53 = vpop.f32.mrb[14].mxu1 }
 0x66f   :  { %v626_v54 = vadd.f32 %v3783_v46, %v621_v50  ;;  %v3176_v55 = vpop.f32.mrb[15].mxu1 }
 0x671   :  { %3517 = vtanh.f32 %v626_v54  ;;  %v2843_v0 = vmul.f32 -1.442695, %v626_v54 }
 0x674   :  { %v765_v56 = vpop.f32.mrb[16].mxu1 }
 0x675   :  { %v772_v57 = vrot.slane %v765_v56, 4  ;;  %v3191_v58 = vpop.f32.mrb[17].mxu1 }
 0x676   :  { %v768_v59 = vpop.f32.mrb[18].mxu1 }
 0x677   :  { %v774_v60 = vadd.f32 %v772_v57, %v3736_v14  ;;  %v3192_v61 = vpop.f32.mrb[19].mxu1 }
 0x679   :  { %3519 = vtanh.f32 %v774_v60  ;;  %v2850_v2 = vmul.f32 -1.442695, %v774_v60 }
 0x67a   :  { %3521 = vpow2.f32 %v2843_v0 }
 0x67b   :  { %v3518_v62 = vpop.eup %3517  ;;  %3523 = vpow2.f32 %v2850_v2 }
 0x67c   :  { %636 = vrot.lane.b32.xlu0 %v3518_v62, %s3666_s6 }
 0x683   :  { %v3520_v63 = vpop.eup %3519 }
 0x684   :  { %787 = vrot.lane.b32.xlu1 %v3520_v63, %s3666_s6  ;;  %v3522_v3 = vpop.eup %3521 }
 0x685   :  { %v630_v4 = vadd.f32 1.0, %v3522_v3  ;;  %v3524_v5 = vpop.eup %3523 }
 0x686   :  { %v778_v6 = vadd.f32 1.0, %v3524_v5 }
 0x687   :  { %3525 = vrcp.f32 %v630_v4 }
 0x688   :  { %3527 = vrcp.f32 %v778_v6 }
 0x691   :  { %v3526_v7 = vpop.eup %3525 }
 0x692   :  { %v3528_v10 = vpop.eup %3527  ;;  %v634_v16 = vmul.f32 %v3526_v7, %v3791_v13  ;;  %v3437_v13 = vld [vmem:[%s4316_s3] sm:$0xff]  }
 0x693   :  { %v785_v22 = vmul.f32 %v3528_v10, %v783_v21  ;;  %3178 = vmatpush3.bf16.msra.mxu0 %v3437_v13 }
 0x694   :  { %3179 = vmatprep.subr.bf16.mxu0 %v3663_v1 }
 0x697   :  { %3180 = vmatpush3.bf16.msra.mxu0 %v3438_v26 }
 0x698   :  { %3193 = vmatprep.subr.bf16.mxu0 %v3663_v1 }
 0x6ee   :  { %v637_v8 = vpop.permute.xlu0 %636 }
 0x6ef   :  { %v639_v9 = vmul.f32 %v3526_v7, %v637_v8 }
 0x6f1   :  { %641 = vrot.lane.b32.xlu0 %v639_v9, %s3667_s7 }
 0x6f6   :  { %v788_v12 = vpop.permute.xlu1 %787 }
 0x6f7   :  { %v790_v15 = vmul.f32 %v3528_v10, %v788_v12 }
 0x6f9   :  { %792 = vrot.lane.b32.xlu1 %v790_v15, %s3667_s7 }
 0x763   :  { %v642_v17 = vpop.permute.xlu0 %641 }
 0x764   :  { %v3859_v19 = vadd.f32 %v642_v17, %v634_v16 }
 0x766   :  { %3529 = vtanh.f32 %v3859_v19 }
 0x76b   :  { %v793_v23 = vpop.permute.xlu1 %792 }
 0x76c   :  { %v3863_v24 = vadd.f32 %v793_v23, %v785_v22 }
 0x76e   :  { %3531 = vtanh.f32 %v3863_v24 }
 0x770   :  { %v3530_v25 = vpop.eup %3529 }
 0x771   :  { %647 = vrot.lane.b32.xlu0 %v3530_v25, %s3666_s6  ;;  %v1079_v25 = vrot.slane %v3863_v24, 6 }
 0x778   :  { %v3532_v18 = vpop.eup %3531 }
 0x779   :  { %798 = vrot.lane.b32.xlu1 %v3532_v18, %s3666_s6 }
 0x7e3   :  { %v648_v29 = vpop.permute.xlu0 %647 }
 0x7e4   :  { %v650_v30 = vmul.f32 %v3526_v7, %v648_v29  ;;  %v3448_v29 = vld [vmem:[%s4314_s1 + $0x20] sm:$0xff]  }
 0x7e6   :  { %v651_v31 = vpack.c.bf16 %v650_v30, %v650_v30  ;;  %v3450_v30 = vld [vmem:[%s4314_s1 + $0x28] sm:$0xff]  }
 0x7e8   :  { %657 = vrot.lane.b32.xlu0 %v651_v31, %s3667_s7 }
 0x7eb   :  { %v799_v32 = vpop.permute.xlu1 %798 }
 0x7ec   :  { %v801_v33 = vmul.f32 %v3528_v10, %v799_v32 }
 0x7ee   :  { %v802_v34 = vpack.c.bf16 %v801_v33, %v801_v33 }
 0x7f0   :  { %v864_v35 = vrot.slane %v802_v34, 2 }
 0x7f2   :  { %865 = vrot.lane.b32.xlu1 %v864_v35, %s3667_s7 }
 0x85a   :  { %v658_v37 = vpop.permute.xlu0 %657 }
 0x85b   :  { %3182 = vmatmul.mubr.msk.bf16.vlgmr.msra.gmra.mrb[16].mxu0 %vm59_vm0, %v658_v37 }
 0x85c   :  { %3194 = vmatpush3.bf16.msra.mxu0 %v3439_v36  ;;  %3197 = vmatprep.mubr.msk.bf16.mxu0 %vm3664_vm1, %v3663_v1 }
 0x85d   :  { %3195 = vmatprep.subr.bf16.mxu0 %v3663_v1 }
 0x860   :  { %3196 = vmatpush3.bf16.msra.mxu0 %v3441_v38  ;;  %v3447_v38 = vld [vmem:[%s4314_s1 + $0x30] sm:$0xff]  }
 0x861   :  { %3209 = vmatprep.subr.bf16.mxu0 %v3663_v1 }
 0x863   :  { %3198 = vmatmul.mubr.msk.bf16.vlgmr.msra.gmra.mrb[20].mxu0 %vm59_vm0, %v658_v37 }
 0x864   :  { %v866_v41 = vpop.permute.xlu1 %865  ;;  %3213 = vmatprep.mubr.msk.bf16.mxu0 %vm3664_vm1, %v3663_v1 }
 0x865   :  { %3206 = vmatmul.mubr.msk.bf16.vlgmr.msra.gmra.mrb[20].mxu1 %vm59_vm0, %v866_v41 }
 0x866   :  { %3218 = vmatpush3.bf16.msra.mxu1 %v3443_v40  ;;  %3221 = vmatprep.mubr.msk.bf16.mxu1 %vm3664_vm1, %v3663_v1 }
 0x867   :  { %3219 = vmatprep.subr.bf16.mxu1 %v3663_v1 }
 0x86a   :  { %3220 = vmatpush3.bf16.msra.mxu1 %v3444_v42  ;;  %v3451_v42 = vld [vmem:[%s4314_s1 + $0x10] sm:$0xff]  }
 0x86b   :  { %3233 = vmatprep.subr.bf16.mxu1 %v3663_v1 }
 0x86d   :  { %3222 = vmatmul.mubr.msk.bf16.vlgmr.msra.gmra.mrb[24].mxu1 %vm59_vm0, %v866_v41  ;;  %v3449_v41 = vld [vmem:[%s4314_s1 + $0x38] sm:$0xff]  }
 0x86e   :  { %3237 = vmatprep.mubr.msk.bf16.mxu1 %vm3664_vm1, %v3663_v1  ;;  %3234 = vmatpush3.bf16.msra.mxu1 %v3448_v29 }
 0x86f   :  { %3235 = vmatprep.subr.bf16.mxu1 %v3663_v1 }
 0x872   :  { %3236 = vmatpush3.bf16.msra.mxu1 %v3450_v30 }
 0x873   :  { %3249 = vmatprep.subr.bf16.mxu1 %v3663_v1 }
 0x92e   :  { %v708_v43 = vpop.f32.mrb[16].mxu0 }
 0x92f   :  { %v709_v44 = vadd.f32 %v3849_v39, %v708_v43  ;;  %v3183_v45 = vpop.f32.mrb[17].mxu0 }
 0x930   :  { %v711_v47 = vpop.f32.mrb[18].mxu0 }
 0x931   :  { %714 = vst [vmem:[#allocation2 + $0x2] sm:$0x3] %v709_v44  ;;  %v3184_v48 = vpop.f32.mrb[19].mxu0  ;;  %v3452_v44 = vld [vmem:[%s4314_s1 + $0x18] sm:$0xff]  }
 0x936   :  { %v853_v49 = vpop.f32.mrb[20].mxu0 }
 0x937   :  { %v3199_v50 = vpop.f32.mrb[21].mxu0 }
 0x938   :  { %v856_v51 = vpop.f32.mrb[22].mxu0  ;;  %v916_v52 = vpop.f32.mrb[20].mxu1 }
 0x939   :  { %v917_v53 = vadd.f32 %v916_v52, %v853_v49  ;;  %v3200_v54 = vpop.f32.mrb[23].mxu0  ;;  %v3207_v55 = vpop.f32.mrb[21].mxu1 }
 0x93a   :  { %v919_v56 = vpop.f32.mrb[22].mxu1 }
 0x93b   :  { %v922_v57 = vadd.f32 %v3783_v46, %v917_v53  ;;  %v3208_v58 = vpop.f32.mrb[23].mxu1 }
 0x93d   :  { %3533 = vtanh.f32 %v922_v57  ;;  %v2865_v4 = vmul.f32 -1.442695, %v922_v57 }
 0x940   :  { %v1061_v59 = vpop.f32.mrb[24].mxu1 }
 0x941   :  { %v1068_v60 = vrot.slane %v1061_v59, 2  ;;  %v3223_v61 = vpop.f32.mrb[25].mxu1 }
 0x942   :  { %v1064_v62 = vpop.f32.mrb[26].mxu1 }
 0x943   :  { %v1070_v63 = vadd.f32 %v1068_v60, %v3736_v14  ;;  %v3224_v0 = vpop.f32.mrb[27].mxu1 }
 0x945   :  { %3535 = vtanh.f32 %v1070_v63  ;;  %v2872_v5 = vmul.f32 -1.442695, %v1070_v63 }
 0x946   :  { %3537 = vpow2.f32 %v2865_v4 }
 0x947   :  { %v3534_v2 = vpop.eup %3533  ;;  %3539 = vpow2.f32 %v2872_v5 }
 0x948   :  { %932 = vrot.lane.b32.xlu0 %v3534_v2, %s3666_s6 }
 0x94f   :  { %v3536_v3 = vpop.eup %3535 }
 0x950   :  { %1083 = vrot.lane.b32.xlu1 %v3536_v3, %s3666_s6  ;;  %v3538_v6 = vpop.eup %3537 }
 0x951   :  { %v926_v7 = vadd.f32 1.0, %v3538_v6  ;;  %v3540_v8 = vpop.eup %3539 }
 0x952   :  { %v1074_v9 = vadd.f32 1.0, %v3540_v8 }
 0x953   :  { %3541 = vrcp.f32 %v926_v7 }
 0x954   :  { %3543 = vrcp.f32 %v1074_v9 }
 0x95d   :  { %v3542_v10 = vpop.eup %3541 }
 0x95e   :  { %v3544_v15 = vpop.eup %3543  ;;  %v930_v21 = vmul.f32 %v3542_v10, %v3859_v19  ;;  %v3445_v19 = vld [vmem:[%s4316_s3] sm:$0xff]  }
 0x95f   :  { %v1081_v13 = vmul.f32 %v3544_v15, %v1079_v25  ;;  %3210 = vmatpush3.bf16.msra.mxu0 %v3445_v19 }
 0x960   :  { %3211 = vmatprep.subr.bf16.mxu0 %v3663_v1 }
 0x963   :  { %3212 = vmatpush3.bf16.msra.mxu0 %v3446_v28 }
 0x964   :  { %3225 = vmatprep.subr.bf16.mxu0 %v3663_v1 }
 0x9ba   :  { %v933_v14 = vpop.permute.xlu0 %932 }
 0x9bb   :  { %v935_v12 = vmul.f32 %v3542_v10, %v933_v14 }
 0x9bd   :  { %937 = vrot.lane.b32.xlu0 %v935_v12, %s3667_s7 }
 0x9c2   :  { %v1084_v16 = vpop.permute.xlu1 %1083 }
 0x9c3   :  { %v1086_v17 = vmul.f32 %v3544_v15, %v1084_v16 }
 0x9c5   :  { %1088 = vrot.lane.b32.xlu1 %v1086_v17, %s3667_s7 }
 0xa2f   :  { %v938_v22 = vpop.permute.xlu0 %937 }
 0xa30   :  { %v3922_v23 = vadd.f32 %v938_v22, %v930_v21 }
 0xa32   :  { %3545 = vtanh.f32 %v3922_v23 }
 0xa37   :  { %v1089_v26 = vpop.permute.xlu1 %1088 }
 0xa38   :  { %v3926_v18 = vadd.f32 %v1089_v26, %v1081_v13 }
 0xa3a   :  { %3547 = vtanh.f32 %v3926_v18  ;;  %v1372_v26 = vrot.slane %v3926_v18, 6  ;;  %v3454_v18 = vld [vmem:[%s4316_s3 + $0x8] sm:$0xff]  }
 0xa3c   :  { %v3546_v27 = vpop.eup %3545 }
 0xa3d   :  { %943 = vrot.lane.b32.xlu0 %v3546_v27, %s3666_s6 }
 0xa44   :  { %v3548_v24 = vpop.eup %3547 }
 0xa45   :  { %1094 = vrot.lane.b32.xlu1 %v3548_v24, %s3666_s6  ;;  %v3453_v24 = vld [vmem:[%s4316_s3] sm:$0xff]  }
 0xaaf   :  { %v944_v31 = vpop.permute.xlu0 %943 }
 0xab0   :  { %v946_v32 = vmul.f32 %v3542_v10, %v944_v31  ;;  %v3457_v31 = vld [vmem:[%s4314_s1 + $0x28] sm:$0xff]  }
 0xab2   :  { %v947_v33 = vpack.c.bf16 %v946_v32, %v946_v32 }
 0xab4   :  { %953 = vrot.lane.b32.xlu0 %v947_v33, %s3667_s7 }
 0xab7   :  { %v1095_v34 = vpop.permute.xlu1 %1094 }
 0xab8   :  { %v1097_v35 = vmul.f32 %v3544_v15, %v1095_v34 }
 0xaba   :  { %v1098_v36 = vpack.c.bf16 %v1097_v35, %v1097_v35 }
 0xabc   :  { %v1160_v37 = vrot.slane %v1098_v36, 3 }
 0xabe   :  { %1161 = vrot.lane.b32.xlu1 %v1160_v37, %s3667_s7 }
 0xb26   :  { %v954_v40 = vpop.permute.xlu0 %953 }
 0xb27   :  { %3214 = vmatmul.mubr.msk.bf16.vlgmr.msra.gmra.mrb[24].mxu0 %vm59_vm0, %v954_v40 }
 0xb28   :  { %3226 = vmatpush3.bf16.msra.mxu0 %v3447_v38  ;;  %3229 = vmatprep.mubr.msk.bf16.mxu0 %vm3664_vm1, %v3663_v1  ;;  %v3456_v38 = vld [vmem:[%s4314_s1 + $0x30] sm:$0xff]  }
 0xb29   :  { %3227 = vmatprep.subr.bf16.mxu0 %v3663_v1 }
 0xb2c   :  { %3228 = vmatpush3.bf16.msra.mxu0 %v3449_v41  ;;  %v3458_v41 = vld [vmem:[%s4314_s1 + $0x38] sm:$0xff]  }
 0xb2d   :  { %3241 = vmatprep.subr.bf16.mxu0 %v3663_v1 }
 0xb2f   :  { %3230 = vmatmul.mubr.msk.bf16.vlgmr.msra.gmra.mrb[28].mxu0 %vm59_vm0, %v954_v40 }
 0xb30   :  { %v1162_v43 = vpop.permute.xlu1 %1161  ;;  %3245 = vmatprep.mubr.msk.bf16.mxu0 %vm3664_vm1, %v3663_v1  ;;  %3242 = vmatpush3.bf16.msra.mxu0 %v3453_v24 }
 0xb31   :  { %3238 = vmatmul.mubr.msk.bf16.vlgmr.msra.gmra.mrb[28].mxu1 %vm59_vm0, %v1162_v43  ;;  %3243 = vmatprep.subr.bf16.mxu0 %v3663_v1 }
 0xb32   :  { %3250 = vmatpush3.bf16.msra.mxu1 %v3451_v42  ;;  %3253 = vmatprep.mubr.msk.bf16.mxu1 %vm3664_vm1, %v3663_v1  ;;  %v3459_v42 = vld [vmem:[%s4314_s1 + $0x10] sm:$0xff]  }
 0xb33   :  { %3251 = vmatprep.subr.bf16.mxu1 %v3663_v1 }
 0xb34   :  { %3244 = vmatpush3.bf16.msra.mxu0 %v3454_v18  ;;  %v3461_v18 = vld [vmem:[%s4316_s3] sm:$0xff]  }
 0xb35   :  { %3257 = vmatprep.subr.bf16.mxu0 %v3663_v1 }
 0xb36   :  { %3252 = vmatpush3.bf16.msra.mxu1 %v3452_v44  ;;  %v3460_v44 = vld [vmem:[%s4314_s1 + $0x18] sm:$0xff]  }
 0xb37   :  { %3265 = vmatprep.subr.bf16.mxu1 %v3663_v1 }
 0xb39   :  { %3254 = vmatmul.mubr.msk.bf16.vlgmr.msra.gmra.mrb[32].mxu1 %vm59_vm0, %v1162_v43 }
 0xb3a   :  { %3269 = vmatprep.mubr.msk.bf16.mxu1 %vm3664_vm1, %v3663_v1 }
 0xbfa   :  { %v1004_v45 = vpop.f32.mrb[24].mxu0 }
 0xbfb   :  { %v1005_v47 = vadd.f32 %v3849_v39, %v1004_v45  ;;  %v3215_v48 = vpop.f32.mrb[25].mxu0 }
 0xbfc   :  { %v1007_v49 = vpop.f32.mrb[26].mxu0 }
 0xbfd   :  { %1010 = vst [vmem:[#allocation2 + $0x4] sm:$0x3] %v1005_v47  ;;  %v3216_v50 = vpop.f32.mrb[27].mxu0 }
 0xc02   :  { %v1149_v51 = vpop.f32.mrb[28].mxu0 }
 0xc03   :  { %v3231_v52 = vpop.f32.mrb[29].mxu0 }
 0xc04   :  { %v1152_v53 = vpop.f32.mrb[30].mxu0  ;;  %v1212_v54 = vpop.f32.mrb[28].mxu1 }
 0xc05   :  { %v1213_v55 = vadd.f32 %v1212_v54, %v1149_v51  ;;  %v3232_v56 = vpop.f32.mrb[31].mxu0  ;;  %v3239_v57 = vpop.f32.mrb[29].mxu1 }
 0xc06   :  { %v1215_v58 = vpop.f32.mrb[30].mxu1 }
 0xc07   :  { %v1218_v59 = vadd.f32 %v3783_v46, %v1213_v55  ;;  %v3240_v60 = vpop.f32.mrb[31].mxu1 }
 0xc09   :  { %3549 = vtanh.f32 %v1218_v59  ;;  %v2887_v5 = vmul.f32 -1.442695, %v1218_v59 }
 0xc0c   :  { %v1357_v61 = vpop.f32.mrb[32].mxu1 }
 0xc0d   :  { %v1363_v62 = vadd.f32 %v1357_v61, %v3739_v20  ;;  %v3255_v63 = vpop.f32.mrb[33].mxu1 }
 0xc0e   :  { %v1360_v0 = vpop.f32.mrb[34].mxu1 }
 0xc0f   :  { %3551 = vtanh.f32 %v1363_v62  ;;  %v3256_v2 = vpop.f32.mrb[35].mxu1  ;;  %v2894_v6 = vmul.f32 -1.442695, %v1363_v62 }
 0xc10   :  { %3553 = vpow2.f32 %v2887_v5 }
 0xc11   :  { %3555 = vpow2.f32 %v2894_v6 }
 0xc13   :  { %v3550_v3 = vpop.eup %3549 }
 0xc14   :  { %1228 = vrot.lane.b32.xlu0 %v3550_v3, %s3666_s6 }
 0xc19   :  { %v3552_v4 = vpop.eup %3551 }
 0xc1a   :  { %1376 = vrot.lane.b32.xlu1 %v3552_v4, %s3666_s6  ;;  %v3554_v7 = vpop.eup %3553 }
 0xc1b   :  { %v1222_v8 = vadd.f32 1.0, %v3554_v7  ;;  %v3556_v9 = vpop.eup %3555 }
 0xc1c   :  { %v1367_v10 = vadd.f32 1.0, %v3556_v9 }
 0xc1d   :  { %3557 = vrcp.f32 %v1222_v8 }
 0xc1e   :  { %3559 = vrcp.f32 %v1367_v10 }
 0xc27   :  { %v3558_v14 = vpop.eup %3557 }
 0xc28   :  { %v3560_v16 = vpop.eup %3559  ;;  %v1226_v22 = vmul.f32 %v3558_v14, %v3922_v23  ;;  %v3455_v23 = vld [vmem:[%s4314_s1 + $0x20] sm:$0xff]  }
 0xc29   :  { %v1374_v27 = vmul.f32 %v3560_v16, %v1372_v26  ;;  %3266 = vmatpush3.bf16.msra.mxu1 %v3455_v23 }
 0xc2a   :  { %3267 = vmatprep.subr.bf16.mxu1 %v3663_v1 }
 0xc2d   :  { %3268 = vmatpush3.bf16.msra.mxu1 %v3457_v31  ;;  %v3465_v31 = vld [vmem:[%s4314_s1 + $0x28] sm:$0xff]  }
 0xc2e   :  { %3281 = vmatprep.subr.bf16.mxu1 %v3663_v1 }
 0xc86   :  { %v1229_v12 = vpop.permute.xlu0 %1228 }
 0xc87   :  { %v1231_v15 = vmul.f32 %v3558_v14, %v1229_v12 }
 0xc89   :  { %1233 = vrot.lane.b32.xlu0 %v1231_v15, %s3667_s7 }
 0xc8c   :  { %v1377_v17 = vpop.permute.xlu1 %1376 }
 0xc8d   :  { %v1379_v21 = vmul.f32 %v3560_v16, %v1377_v17 }
 0xc8f   :  { %1381 = vrot.lane.b32.xlu1 %v1379_v21, %s3667_s7 }
 0xcfb   :  { %v1234_v25 = vpop.permute.xlu0 %1233 }
 0xcfc   :  { %v3985_v13 = vadd.f32 %v1234_v25, %v1226_v22 }
 0xcfe   :  { %3561 = vtanh.f32 %v3985_v13 }
 0xd01   :  { %v1382_v19 = vpop.permute.xlu1 %1381 }
 0xd02   :  { %v3989_v28 = vadd.f32 %v1382_v19, %v1374_v27 }
 0xd04   :  { %3563 = vtanh.f32 %v3989_v28  ;;  %v1667_v27 = vrot.slane %v3989_v28, 6 }
 0xd08   :  { %v3562_v29 = vpop.eup %3561 }
 0xd09   :  { %1239 = vrot.lane.b32.xlu0 %v3562_v29, %s3666_s6 }
 0xd0e   :  { %v3564_v30 = vpop.eup %3563 }
 0xd0f   :  { %1387 = vrot.lane.b32.xlu1 %v3564_v30, %s3666_s6  ;;  %v3463_v30 = vld [vmem:[%s4314_s1 + $0x20] sm:$0xff]  }
 0xd7b   :  { %v1240_v32 = vpop.permute.xlu0 %1239 }
 0xd7c   :  { %v1242_v33 = vmul.f32 %v3558_v14, %v1240_v32 }
 0xd7e   :  { %v1243_v34 = vpack.c.bf16 %v1242_v33, %v1242_v33 }
 0xd80   :  { %1249 = vrot.lane.b32.xlu0 %v1243_v34, %s3667_s7 }
 0xd81   :  { %v1388_v35 = vpop.permute.xlu1 %1387 }
 0xd82   :  { %v1390_v36 = vmul.f32 %v3560_v16, %v1388_v35 }
 0xd84   :  { %v1391_v37 = vpack.c.bf16 %v1390_v36, %v1390_v36 }
 0xd86   :  { %1453 = vrot.lane.b32.xlu1 %v1391_v37, %s3667_s7 }
 0xdf2   :  { %v1250_v40 = vpop.permute.xlu0 %1249 }
 0xdf3   :  { %3246 = vmatmul.mubr.msk.bf16.vlgmr.msra.gmra.mrb[32].mxu0 %vm59_vm0, %v1250_v40 }
 0xdf4   :  { %3258 = vmatpush3.bf16.msra.mxu0 %v3456_v38  ;;  %3261 = vmatprep.mubr.msk.bf16.mxu0 %vm3664_vm1, %v3663_v1 }
 0xdf5   :  { %3259 = vmatprep.subr.bf16.mxu0 %v3663_v1 }
 0xdf8   :  { %3260 = vmatpush3.bf16.msra.mxu0 %v3458_v41  ;;  %v1454_v43 = vpop.permute.xlu1 %1453 }
 0xdf9   :  { %3270 = vmatmul.mubr.msk.bf16.vlgmr.msra.gmra.mrb[36].mxu1 %vm59_vm0, %v1454_v43  ;;  %3273 = vmatprep.subr.bf16.mxu0 %v3663_v1 }
 0xdfa   :  { %3282 = vmatpush3.bf16.msra.mxu1 %v3459_v42  ;;  %3285 = vmatprep.mubr.msk.bf16.mxu1 %vm3664_vm1, %v3663_v1  ;;  %v3466_v42 = vld [vmem:[%s4314_s1 + $0x38] sm:$0xff]  }
 0xdfb   :  { %3262 = vmatmul.mubr.msk.bf16.vlgmr.msra.gmra.mrb[36].mxu0 %vm59_vm0, %v1250_v40  ;;  %3283 = vmatprep.subr.bf16.mxu1 %v3663_v1  ;;  %v3464_v40 = vld [vmem:[%s4314_s1 + $0x30] sm:$0xff]  }
 0xdfc   :  { %3277 = vmatprep.mubr.msk.bf16.mxu0 %vm3664_vm1, %v3663_v1  ;;  %3274 = vmatpush3.bf16.msra.mxu0 %v3461_v18 }
 0xdfd   :  { %3275 = vmatprep.subr.bf16.mxu0 %v3663_v1 }
 0xdfe   :  { %3284 = vmatpush3.bf16.msra.mxu1 %v3460_v44 }
 0xdff   :  { %3297 = vmatprep.subr.bf16.mxu1 %v3663_v1 }
 0xe01   :  { %3286 = vmatmul.mubr.msk.bf16.vlgmr.msra.gmra.mrb[40].mxu1 %vm59_vm0, %v1454_v43  ;;  %v3467_v43 = vld [vmem:[%s4314_s1 + $0x10] sm:$0xff]  }
 0xe02   :  { %3301 = vmatprep.mubr.msk.bf16.mxu1 %vm3664_vm1, %v3663_v1  ;;  %3298 = vmatpush3.bf16.msra.mxu1 %v3463_v30 }
 0xe03   :  { %3299 = vmatprep.subr.bf16.mxu1 %v3663_v1 }
 0xe06   :  { %3300 = vmatpush3.bf16.msra.mxu1 %v3465_v31  ;;  %v3470_v31 = vld [vmem:[%s4316_s3 + $0x8] sm:$0xff]  }
 0xe07   :  { %3313 = vmatprep.subr.bf16.mxu1 %v3663_v1 }
 0xec6   :  { %v1300_v45 = vpop.f32.mrb[32].mxu0 }
 0xec7   :  { %v1301_v47 = vadd.f32 %v3849_v39, %v1300_v45  ;;  %v3247_v48 = vpop.f32.mrb[33].mxu0  ;;  %v3468_v45 = vld [vmem:[%s4314_s1 + $0x18] sm:$0xff]  }
 0xec8   :  { %v1303_v49 = vpop.f32.mrb[34].mxu0 }
 0xec9   :  { %1306 = vst [vmem:[#allocation2 + $0x6] sm:$0x3] %v1301_v47  ;;  %v3248_v50 = vpop.f32.mrb[35].mxu0 }
 0xecc   :  { %v1504_v51 = vpop.f32.mrb[36].mxu1 }
 0xecd   :  { %v3271_v52 = vpop.f32.mrb[37].mxu1 }
 0xece   :  { %v1442_v53 = vpop.f32.mrb[36].mxu0  ;;  %v1507_v54 = vpop.f32.mrb[38].mxu1 }
 0xecf   :  { %v1505_v55 = vadd.f32 %v1504_v51, %v1442_v53  ;;  %v3263_v56 = vpop.f32.mrb[37].mxu0  ;;  %v3272_v57 = vpop.f32.mrb[39].mxu1 }
 0xed0   :  { %v1445_v58 = vpop.f32.mrb[38].mxu0 }
 0xed1   :  { %v1510_v59 = vadd.f32 %v3783_v46, %v1505_v55  ;;  %v3264_v60 = vpop.f32.mrb[39].mxu0 }
 0xed3   :  { %3565 = vtanh.f32 %v1510_v59  ;;  %v2909_v6 = vmul.f32 -1.442695, %v1510_v59  ;;  %v4107_v59 = vld [vmem:[%s4315_s2 + $0x1] ss:$0 sm:$0xff] }
 0xed4   :  { %v1649_v61 = vpop.f32.mrb[40].mxu1 }
 0xed5   :  { %v1656_v62 = vrot.slane %v1649_v61, 6  ;;  %v3287_v63 = vpop.f32.mrb[41].mxu1 }
 0xed6   :  { %v1652_v0 = vpop.f32.mrb[42].mxu1 }
 0xed7   :  { %v1658_v2 = vadd.f32 %v1656_v62, %v3739_v20  ;;  %v3288_v3 = vpop.f32.mrb[43].mxu1 }
 0xed9   :  { %3567 = vtanh.f32 %v1658_v2  ;;  %v2916_v7 = vmul.f32 -1.442695, %v1658_v2 }
 0xeda   :  { %3569 = vpow2.f32 %v2909_v6 }
 0xedb   :  { %3571 = vpow2.f32 %v2916_v7 }
 0xedd   :  { %v3566_v4 = vpop.eup %3565 }
 0xede   :  { %1520 = vrot.lane.b32.xlu0 %v3566_v4, %s3666_s6 }
 0xee3   :  { %v3568_v5 = vpop.eup %3567 }
 0xee4   :  { %1671 = vrot.lane.b32.xlu1 %v3568_v5, %s3666_s6  ;;  %v3570_v46 = vpop.eup %3569 }
 0xee5   :  { %v1514_v8 = vadd.f32 1.0, %v3570_v46  ;;  %v3572_v9 = vpop.eup %3571 }
 0xee6   :  { %v1662_v10 = vadd.f32 1.0, %v3572_v9 }
 0xee7   :  { %3573 = vrcp.f32 %v1514_v8 }
 0xee8   :  { %3575 = vrcp.f32 %v1662_v10 }
 0xef1   :  { %v3574_v14 = vpop.eup %3573 }
 0xef2   :  { %v3576_v16 = vpop.eup %3575  ;;  %v1518_v22 = vmul.f32 %v3574_v14, %v3985_v13  ;;  %v3462_v13 = vld [vmem:[%s4316_s3 + $0x8] sm:$0xff]  }
 0xef3   :  { %v1669_v19 = vmul.f32 %v3576_v16, %v1667_v27  ;;  %3276 = vmatpush3.bf16.msra.mxu0 %v3462_v13 }
 0xef4   :  { %3289 = vmatprep.subr.bf16.mxu0 %v3663_v1 }
 0xf50   :  { %v1521_v12 = vpop.permute.xlu0 %1520 }
 0xf51   :  { %v1523_v15 = vmul.f32 %v3574_v14, %v1521_v12 }
 0xf53   :  { %1525 = vrot.lane.b32.xlu0 %v1523_v15, %s3667_s7 }
 0xf56   :  { %v1672_v17 = vpop.permute.xlu1 %1671 }
 0xf57   :  { %v1674_v21 = vmul.f32 %v3576_v16, %v1672_v17 }
 0xf59   :  { %1676 = vrot.lane.b32.xlu1 %v1674_v21, %s3667_s7 }
 0xfc5   :  { %v1526_v25 = vpop.permute.xlu0 %1525 }
 0xfc6   :  { %v4048_v26 = vadd.f32 %v1526_v25, %v1518_v22 }
 0xfc8   :  { %3577 = vtanh.f32 %v4048_v26 }
 0xfcb   :  { %v1677_v24 = vpop.permute.xlu1 %1676 }
 0xfcc   :  { %v4052_v23 = vadd.f32 %v1677_v24, %v1669_v19 }
 0xfce   :  { %3579 = vtanh.f32 %v4052_v23 }
 0xfd2   :  { %v3578_v29 = vpop.eup %3577 }
 0xfd3   :  { %1531 = vrot.lane.b32.xlu0 %v3578_v29, %s3666_s6  ;;  %v1963_v29 = vrot.slane %v4052_v23, 6 }
 0xfd8   :  { %v3580_v28 = vpop.eup %3579 }
 0xfd9   :  { %1682 = vrot.lane.b32.xlu1 %v3580_v28, %s3666_s6 }
0x1045   :  { %v1532_v32 = vpop.permute.xlu0 %1531 }
0x1046   :  { %v1534_v33 = vmul.f32 %v3574_v14, %v1532_v32  ;;  %v3472_v32 = vld [vmem:[%s4314_s1 + $0x20] sm:$0xff]  }
0x1048   :  { %v1535_v34 = vpack.c.bf16 %v1534_v33, %v1534_v33  ;;  %v3474_v33 = vld [vmem:[%s4314_s1 + $0x28] sm:$0xff]  }
0x104a   :  { %1541 = vrot.lane.b32.xlu0 %v1535_v34, %s3667_s7 }
0x104b   :  { %v1683_v35 = vpop.permute.xlu1 %1682 }
0x104c   :  { %v1685_v36 = vmul.f32 %v3576_v16, %v1683_v35 }
0x104e   :  { %v1686_v37 = vpack.c.bf16 %v1685_v36, %v1685_v36 }
0x1050   :  { %v1748_v38 = vrot.slane %v1686_v37, 1 }
0x1052   :  { %1749 = vrot.lane.b32.xlu1 %v1748_v38, %s3667_s7 }
0x10bc   :  { %v1542_v41 = vpop.permute.xlu0 %1541 }
0x10bd   :  { %3278 = vmatmul.mubr.msk.bf16.vlgmr.msra.gmra.mrb[40].mxu0 %vm59_vm0, %v1542_v41 }
0x10be   :  { %3290 = vmatpush3.bf16.msra.mxu0 %v3464_v40  ;;  %3293 = vmatprep.mubr.msk.bf16.mxu0 %vm3664_vm1, %v3663_v1 }
0x10bf   :  { %3291 = vmatprep.subr.bf16.mxu0 %v3663_v1 }
0x10c2   :  { %3292 = vmatpush3.bf16.msra.mxu0 %v3466_v42  ;;  %v3471_v42 = vld [vmem:[%s4314_s1 + $0x30] sm:$0xff]  }
0x10c3   :  { %3305 = vmatprep.subr.bf16.mxu0 %v3663_v1 }
0x10c4   :  { %v1750_v44 = vpop.permute.xlu1 %1749 }
0x10c5   :  { %3294 = vmatmul.mubr.msk.bf16.vlgmr.msra.gmra.mrb[44].mxu0 %vm59_vm0, %v1542_v41  ;;  %3302 = vmatmul.mubr.msk.bf16.vlgmr.msra.gmra.mrb[44].mxu1 %vm59_vm0, %v1750_v44 }
0x10c6   :  { %3314 = vmatpush3.bf16.msra.mxu1 %v3467_v43  ;;  %3317 = vmatprep.mubr.msk.bf16.mxu1 %vm3664_vm1, %v3663_v1 }
0x10c7   :  { %3315 = vmatprep.subr.bf16.mxu1 %v3663_v1  ;;  %3309 = vmatprep.mubr.msk.bf16.mxu0 %vm3664_vm1, %v3663_v1 }
0x10ca   :  { %3316 = vmatpush3.bf16.msra.mxu1 %v3468_v45  ;;  %v3475_v45 = vld [vmem:[%s4314_s1 + $0x10] sm:$0xff]  }
0x10cb   :  { %3329 = vmatprep.subr.bf16.mxu1 %v3663_v1 }
0x10cd   :  { %3318 = vmatmul.mubr.msk.bf16.vlgmr.msra.gmra.mrb[48].mxu1 %vm59_vm0, %v1750_v44  ;;  %v3473_v44 = vld [vmem:[%s4314_s1 + $0x38] sm:$0xff]  }
0x10ce   :  { %3333 = vmatprep.mubr.msk.bf16.mxu1 %vm3664_vm1, %v3663_v1  ;;  %3330 = vmatpush3.bf16.msra.mxu1 %v3472_v32  ;;  %v3480_v32 = vld [vmem:[%s4314_s1 + $0x20] sm:$0xff]  }
0x10cf   :  { %3331 = vmatprep.subr.bf16.mxu1 %v3663_v1 }
0x10d2   :  { %3332 = vmatpush3.bf16.msra.mxu1 %v3474_v33  ;;  %v3482_v33 = vld [vmem:[%s4314_s1 + $0x28] sm:$0xff]  }
0x10d3   :  { %3345 = vmatprep.subr.bf16.mxu1 %v3663_v1 }
0x1190   :  { %v1592_v47 = vpop.f32.mrb[40].mxu0 }
0x1191   :  { %v1593_v48 = vadd.f32 %v3849_v39, %v1592_v47  ;;  %v3279_v49 = vpop.f32.mrb[41].mxu0 }
0x1192   :  { %v1595_v50 = vpop.f32.mrb[42].mxu0 }
0x1193   :  { %1598 = vst [vmem:[#allocation2 + $0x8] sm:$0x3] %v1593_v48  ;;  %v3280_v51 = vpop.f32.mrb[43].mxu0  ;;  %v3476_v48 = vld [vmem:[%s4314_s1 + $0x18] sm:$0xff]  }
0x1198   :  { %v1737_v52 = vpop.f32.mrb[44].mxu0  ;;  %v1800_v53 = vpop.f32.mrb[44].mxu1 }
0x1199   :  { %v1801_v54 = vadd.f32 %v1800_v53, %v1737_v52  ;;  %v3295_v55 = vpop.f32.mrb[45].mxu0  ;;  %v3303_v56 = vpop.f32.mrb[45].mxu1 }
0x119a   :  { %v1740_v57 = vpop.f32.mrb[46].mxu0  ;;  %v1803_v58 = vpop.f32.mrb[46].mxu1 }
0x119b   :  { %v1806_v60 = vadd.f32 %v4107_v59, %v1801_v54  ;;  %v3296_v61 = vpop.f32.mrb[47].mxu0  ;;  %v3304_v62 = vpop.f32.mrb[47].mxu1 }
0x119d   :  { %3581 = vtanh.f32 %v1806_v60  ;;  %v2931_v46 = vmul.f32 -1.442695, %v1806_v60 }
0x11a0   :  { %v1945_v63 = vpop.f32.mrb[48].mxu1 }
0x11a1   :  { %v1952_v0 = vrot.slane %v1945_v63, 4  ;;  %v3319_v2 = vpop.f32.mrb[49].mxu1 }
0x11a2   :  { %v1948_v3 = vpop.f32.mrb[50].mxu1 }
0x11a3   :  { %v1954_v4 = vadd.f32 %v1952_v0, %v3739_v20  ;;  %v3320_v5 = vpop.f32.mrb[51].mxu1 }
0x11a5   :  { %3583 = vtanh.f32 %v1954_v4  ;;  %v2938_v8 = vmul.f32 -1.442695, %v1954_v4 }
0x11a6   :  { %3585 = vpow2.f32 %v2931_v46 }
0x11a7   :  { %v3582_v6 = vpop.eup %3581  ;;  %3587 = vpow2.f32 %v2938_v8 }
0x11a8   :  { %1816 = vrot.lane.b32.xlu0 %v3582_v6, %s3666_s6 }
0x11af   :  { %v3584_v7 = vpop.eup %3583 }
0x11b0   :  { %1967 = vrot.lane.b32.xlu1 %v3584_v7, %s3666_s6  ;;  %v3586_v9 = vpop.eup %3585 }
0x11b1   :  { %v1810_v10 = vadd.f32 1.0, %v3586_v9  ;;  %v3588_v14 = vpop.eup %3587 }
0x11b2   :  { %v1958_v12 = vadd.f32 1.0, %v3588_v14 }
0x11b3   :  { %3589 = vrcp.f32 %v1810_v10 }
0x11b4   :  { %3591 = vrcp.f32 %v1958_v12 }
0x11bd   :  { %v3590_v15 = vpop.eup %3589 }
0x11be   :  { %v3592_v21 = vpop.eup %3591  ;;  %v1814_v27 = vmul.f32 %v3590_v15, %v4048_v26  ;;  %v3469_v26 = vld [vmem:[%s4316_s3] sm:$0xff]  }
0x11bf   :  { %v1965_v18 = vmul.f32 %v3592_v21, %v1963_v29  ;;  %3306 = vmatpush3.bf16.msra.mxu0 %v3469_v26 }
0x11c0   :  { %3307 = vmatprep.subr.bf16.mxu0 %v3663_v1 }
0x11c3   :  { %3308 = vmatpush3.bf16.msra.mxu0 %v3470_v31 }
0x11c4   :  { %3321 = vmatprep.subr.bf16.mxu0 %v3663_v1 }
0x121a   :  { %v1817_v16 = vpop.permute.xlu0 %1816 }
0x121b   :  { %v1819_v17 = vmul.f32 %v3590_v15, %v1817_v16 }
0x121d   :  { %1821 = vrot.lane.b32.xlu0 %v1819_v17, %s3667_s7 }
0x1222   :  { %v1968_v22 = vpop.permute.xlu1 %1967 }
0x1223   :  { %v1970_v25 = vmul.f32 %v3592_v21, %v1968_v22 }
0x1225   :  { %1972 = vrot.lane.b32.xlu1 %v1970_v25, %s3667_s7 }
0x128f   :  { %v1822_v19 = vpop.permute.xlu0 %1821 }
0x1290   :  { %v4116_v24 = vadd.f32 %v1822_v19, %v1814_v27 }
0x1292   :  { %3593 = vtanh.f32 %v4116_v24 }
0x1297   :  { %v1973_v13 = vpop.permute.xlu1 %1972 }
0x1298   :  { %v4120_v28 = vadd.f32 %v1973_v13, %v1965_v18 }
0x129a   :  { %3595 = vtanh.f32 %v4120_v28  ;;  %v2259_v18 = vrot.slane %v4120_v28, 6 }
0x129c   :  { %v3594_v30 = vpop.eup %3593 }
0x129d   :  { %1827 = vrot.lane.b32.xlu0 %v3594_v30, %s3666_s6 }
0x12a4   :  { %v3596_v23 = vpop.eup %3595 }
0x12a5   :  { %1978 = vrot.lane.b32.xlu1 %v3596_v23, %s3666_s6  ;;  %v3478_v23 = vld [vmem:[%s4316_s3 + $0x8] sm:$0xff]  }
0x130f   :  { %v1828_v34 = vpop.permute.xlu0 %1827 }
0x1310   :  { %v1830_v35 = vmul.f32 %v3590_v15, %v1828_v34 }
0x1312   :  { %v1831_v36 = vpack.c.bf16 %v1830_v35, %v1830_v35 }
0x1314   :  { %1837 = vrot.lane.b32.xlu0 %v1831_v36, %s3667_s7 }
0x1317   :  { %v1979_v37 = vpop.permute.xlu1 %1978 }
0x1318   :  { %v1981_v38 = vmul.f32 %v3592_v21, %v1979_v37 }
0x131a   :  { %v1982_v40 = vpack.c.bf16 %v1981_v38, %v1981_v38 }
0x131c   :  { %v2044_v41 = vrot.slane %v1982_v40, 2 }
0x131e   :  { %2045 = vrot.lane.b32.xlu1 %v2044_v41, %s3667_s7 }
0x1386   :  { %v1838_v43 = vpop.permute.xlu0 %1837 }
0x1387   :  { %3310 = vmatmul.mubr.msk.bf16.vlgmr.msra.gmra.mrb[48].mxu0 %vm59_vm0, %v1838_v43 }
0x1388   :  { %3322 = vmatpush3.bf16.msra.mxu0 %v3471_v42  ;;  %3325 = vmatprep.mubr.msk.bf16.mxu0 %vm3664_vm1, %v3663_v1  ;;  %v3479_v42 = vld [vmem:[%s4314_s1 + $0x30] sm:$0xff]  }
0x1389   :  { %3323 = vmatprep.subr.bf16.mxu0 %v3663_v1 }
0x138c   :  { %3324 = vmatpush3.bf16.msra.mxu0 %v3473_v44  ;;  %v3481_v44 = vld [vmem:[%s4314_s1 + $0x38] sm:$0xff]  }
0x138d   :  { %3337 = vmatprep.subr.bf16.mxu0 %v3663_v1 }
0x138f   :  { %3326 = vmatmul.mubr.msk.bf16.vlgmr.msra.gmra.mrb[52].mxu0 %vm59_vm0, %v1838_v43 }
0x1390   :  { %v2046_v47 = vpop.permute.xlu1 %2045  ;;  %3341 = vmatprep.mubr.msk.bf16.mxu0 %vm3664_vm1, %v3663_v1 }
0x1391   :  { %3334 = vmatmul.mubr.msk.bf16.vlgmr.msra.gmra.mrb[52].mxu1 %vm59_vm0, %v2046_v47 }
0x1392   :  { %3346 = vmatpush3.bf16.msra.mxu1 %v3475_v45  ;;  %3349 = vmatprep.mubr.msk.bf16.mxu1 %vm3664_vm1, %v3663_v1  ;;  %v3483_v45 = vld [vmem:[%s4314_s1 + $0x10] sm:$0xff]  }
0x1393   :  { %3347 = vmatprep.subr.bf16.mxu1 %v3663_v1 }
0x1396   :  { %3348 = vmatpush3.bf16.msra.mxu1 %v3476_v48  ;;  %v3484_v48 = vld [vmem:[%s4314_s1 + $0x18] sm:$0xff]  }
0x1397   :  { %3361 = vmatprep.subr.bf16.mxu1 %v3663_v1 }
0x1399   :  { %3350 = vmatmul.mubr.msk.bf16.vlgmr.msra.gmra.mrb[56].mxu1 %vm59_vm0, %v2046_v47 }
0x139a   :  { %3365 = vmatprep.mubr.msk.bf16.mxu1 %vm3664_vm1, %v3663_v1  ;;  %3362 = vmatpush3.bf16.msra.mxu1 %v3480_v32  ;;  %v3489_v32 = vld [vmem:[%s4314_s1 + $0x28] sm:$0xff]  }
0x139b   :  { %3363 = vmatprep.subr.bf16.mxu1 %v3663_v1 }
0x139e   :  { %3364 = vmatpush3.bf16.msra.mxu1 %v3482_v33 }
0x139f   :  { %3377 = vmatprep.subr.bf16.mxu1 %v3663_v1 }
0x145a   :  { %v1888_v49 = vpop.f32.mrb[48].mxu0 }
0x145b   :  { %v1889_v50 = vadd.f32 %v3849_v39, %v1888_v49  ;;  %v3311_v51 = vpop.f32.mrb[49].mxu0 }
0x145c   :  { %v1891_v52 = vpop.f32.mrb[50].mxu0 }
0x145d   :  { %1894 = vst [vmem:[#allocation2 + $0xa] sm:$0x3] %v1889_v50  ;;  %v3312_v53 = vpop.f32.mrb[51].mxu0  ;;  %v4237_v50 = vld [vmem:[%s4317_s4] ss:$0 sm:$0xff] }
0x1462   :  { %v2033_v54 = vpop.f32.mrb[52].mxu0 }
0x1463   :  { %v3327_v55 = vpop.f32.mrb[53].mxu0 }
0x1464   :  { %v2036_v56 = vpop.f32.mrb[54].mxu0  ;;  %v2096_v57 = vpop.f32.mrb[52].mxu1 }
0x1465   :  { %v2097_v58 = vadd.f32 %v2096_v57, %v2033_v54  ;;  %v3328_v60 = vpop.f32.mrb[55].mxu0  ;;  %v3335_v61 = vpop.f32.mrb[53].mxu1 }
0x1466   :  { %v2099_v62 = vpop.f32.mrb[54].mxu1 }
0x1467   :  { %v2102_v63 = vadd.f32 %v4107_v59, %v2097_v58  ;;  %v3336_v0 = vpop.f32.mrb[55].mxu1 }
0x1469   :  { %3597 = vtanh.f32 %v2102_v63  ;;  %v2953_v8 = vmul.f32 -1.442695, %v2102_v63 }
0x146c   :  { %v2241_v2 = vpop.f32.mrb[56].mxu1 }
0x146d   :  { %v2248_v3 = vrot.slane %v2241_v2, 2  ;;  %v3351_v4 = vpop.f32.mrb[57].mxu1 }
0x146e   :  { %v2244_v39 = vpop.f32.mrb[58].mxu1 }
0x146f   :  { %v2250_v5 = vadd.f32 %v2248_v3, %v3739_v20  ;;  %v3352_v6 = vpop.f32.mrb[59].mxu1 }
0x1471   :  { %3599 = vtanh.f32 %v2250_v5  ;;  %v2960_v9 = vmul.f32 -1.442695, %v2250_v5 }
0x1472   :  { %3601 = vpow2.f32 %v2953_v8 }
0x1473   :  { %v3598_v7 = vpop.eup %3597  ;;  %3603 = vpow2.f32 %v2960_v9 }
0x1474   :  { %2112 = vrot.lane.b32.xlu0 %v3598_v7, %s3666_s6 }
0x147b   :  { %v3600_v46 = vpop.eup %3599 }
0x147c   :  { %2263 = vrot.lane.b32.xlu1 %v3600_v46, %s3666_s6  ;;  %v3602_v10 = vpop.eup %3601 }
0x147d   :  { %v2106_v14 = vadd.f32 1.0, %v3602_v10  ;;  %v3604_v12 = vpop.eup %3603 }
0x147e   :  { %v2254_v15 = vadd.f32 1.0, %v3604_v12 }
0x147f   :  { %3605 = vrcp.f32 %v2106_v14 }
0x1480   :  { %3607 = vrcp.f32 %v2254_v15 }
0x1489   :  { %v3606_v16 = vpop.eup %3605 }
0x148a   :  { %v3608_v21 = vpop.eup %3607  ;;  %v2110_v27 = vmul.f32 %v3606_v16, %v4116_v24  ;;  %v3477_v24 = vld [vmem:[%s4316_s3] sm:$0xff]  }
0x148b   :  { %v2261_v13 = vmul.f32 %v3608_v21, %v2259_v18  ;;  %3338 = vmatpush3.bf16.msra.mxu0 %v3477_v24  ;;  %v3485_v24 = vld [vmem:[%s4316_s3] sm:$0xff]  }
0x148c   :  { %3339 = vmatprep.subr.bf16.mxu0 %v3663_v1 }
0x148f   :  { %3340 = vmatpush3.bf16.msra.mxu0 %v3478_v23  ;;  %v3487_v23 = vld [vmem:[%s4314_s1 + $0x20] sm:$0xff]  }
0x1490   :  { %3353 = vmatprep.subr.bf16.mxu0 %v3663_v1 }
0x14e6   :  { %v2113_v20 = vpop.permute.xlu0 %2112 }
0x14e7   :  { %v2115_v17 = vmul.f32 %v3606_v16, %v2113_v20 }
0x14e9   :  { %2117 = vrot.lane.b32.xlu0 %v2115_v17, %s3667_s7 }
0x14ee   :  { %v2264_v22 = vpop.permute.xlu1 %2263 }
0x14ef   :  { %v2266_v25 = vmul.f32 %v3608_v21, %v2264_v22 }
0x14f1   :  { %2268 = vrot.lane.b32.xlu1 %v2266_v25, %s3667_s7 }
0x155b   :  { %v2118_v19 = vpop.permute.xlu0 %2117 }
0x155c   :  { %v4179_v29 = vadd.f32 %v2118_v19, %v2110_v27 }
0x155e   :  { %3609 = vtanh.f32 %v4179_v29 }
0x1563   :  { %v2269_v30 = vpop.permute.xlu1 %2268 }
0x1564   :  { %v4183_v26 = vadd.f32 %v2269_v30, %v2261_v13 }
0x1566   :  { %3611 = vtanh.f32 %v4183_v26  ;;  %v2552_v18 = vrot.slane %v4183_v26, 6  ;;  %v3486_v26 = vld [vmem:[%s4316_s3 + $0x8] sm:$0xff]  }
0x1568   :  { %v3610_v31 = vpop.eup %3609 }
0x1569   :  { %2123 = vrot.lane.b32.xlu0 %v3610_v31, %s3666_s6 }
0x1570   :  { %v3612_v28 = vpop.eup %3611 }
0x1571   :  { %2274 = vrot.lane.b32.xlu1 %v3612_v28, %s3666_s6 }
0x15db   :  { %v2124_v34 = vpop.permute.xlu0 %2123 }
0x15dc   :  { %v2126_v35 = vmul.f32 %v3606_v16, %v2124_v34 }
0x15de   :  { %v2127_v36 = vpack.c.bf16 %v2126_v35, %v2126_v35 }
0x15e0   :  { %2133 = vrot.lane.b32.xlu0 %v2127_v36, %s3667_s7 }
0x15e3   :  { %v2275_v37 = vpop.permute.xlu1 %2274 }
0x15e4   :  { %v2277_v38 = vmul.f32 %v3608_v21, %v2275_v37 }
0x15e6   :  { %v2278_v40 = vpack.c.bf16 %v2277_v38, %v2277_v38 }
0x15e8   :  { %v2340_v41 = vrot.slane %v2278_v40, 3  ;;  %v3488_v40 = vld [vmem:[%s4314_s1 + $0x30] sm:$0xff]  }
0x15ea   :  { %2341 = vrot.lane.b32.xlu1 %v2340_v41, %s3667_s7 }
0x1652   :  { %v2134_v43 = vpop.permute.xlu0 %2133 }
0x1653   :  { %3342 = vmatmul.mubr.msk.bf16.vlgmr.msra.gmra.mrb[56].mxu0 %vm59_vm0, %v2134_v43 }
0x1654   :  { %3354 = vmatpush3.bf16.msra.mxu0 %v3479_v42  ;;  %3357 = vmatprep.mubr.msk.bf16.mxu0 %vm3664_vm1, %v3663_v1  ;;  %v3490_v42 = vld [vmem:[%s4314_s1 + $0x38] sm:$0xff]  }
0x1655   :  { %3355 = vmatprep.subr.bf16.mxu0 %v3663_v1 }
0x1658   :  { %3356 = vmatpush3.bf16.msra.mxu0 %v3481_v44 }
0x1659   :  { %3369 = vmatprep.subr.bf16.mxu0 %v3663_v1 }
0x165b   :  { %3358 = vmatmul.mubr.msk.bf16.vlgmr.msra.gmra.mrb[60].mxu0 %vm59_vm0, %v2134_v43 }
0x165c   :  { %v2342_v47 = vpop.permute.xlu1 %2341  ;;  %3373 = vmatprep.mubr.msk.bf16.mxu0 %vm3664_vm1, %v3663_v1  ;;  %3370 = vmatpush3.bf16.msra.mxu0 %v3485_v24 }
0x165d   :  { %3366 = vmatmul.mubr.msk.bf16.vlgmr.msra.gmra.mrb[60].mxu1 %vm59_vm0, %v2342_v47  ;;  %3371 = vmatprep.subr.bf16.mxu0 %v3663_v1 }
0x165e   :  { %3378 = vmatpush3.bf16.msra.mxu1 %v3483_v45  ;;  %3381 = vmatprep.mubr.msk.bf16.mxu1 %vm3664_vm1, %v3663_v1 }
0x165f   :  { %3379 = vmatprep.subr.bf16.mxu1 %v3663_v1 }
0x1660   :  { %3372 = vmatpush3.bf16.msra.mxu0 %v3486_v26 }
0x1661   :  { %3385 = vmatprep.subr.bf16.mxu0 %v3663_v1 }
0x1662   :  { %3380 = vmatpush3.bf16.msra.mxu1 %v3484_v48 }
0x1663   :  { %3393 = vmatprep.subr.bf16.mxu1 %v3663_v1 }
0x1665   :  { %3382 = vmatmul.mubr.msk.bf16.vlgmr.msra.gmra.mrb[64].mxu1 %vm59_vm0, %v2342_v47 }
0x1666   :  { %3397 = vmatprep.mubr.msk.bf16.mxu1 %vm3664_vm1, %v3663_v1  ;;  %3394 = vmatpush3.bf16.msra.mxu1 %v3487_v23 }
0x1667   :  { %3395 = vmatprep.subr.bf16.mxu1 %v3663_v1 }
0x166a   :  { %3396 = vmatpush3.bf16.msra.mxu1 %v3489_v32 }
0x1726   :  { %v2184_v49 = vpop.f32.mrb[56].mxu0 }
0x1727   :  { %v2185_v51 = vadd.f32 %v4237_v50, %v2184_v49  ;;  %v3343_v52 = vpop.f32.mrb[57].mxu0 }
0x1728   :  { %v2187_v53 = vpop.f32.mrb[58].mxu0 }
0x1729   :  { %2190 = vst [vmem:[#allocation2 + $0xc] sm:$0x3] %v2185_v51  ;;  %v3344_v54 = vpop.f32.mrb[59].mxu0 }
0x172e   :  { %v2329_v55 = vpop.f32.mrb[60].mxu0 }
0x172f   :  { %v3359_v56 = vpop.f32.mrb[61].mxu0 }
0x1730   :  { %v2332_v57 = vpop.f32.mrb[62].mxu0  ;;  %v2392_v58 = vpop.f32.mrb[60].mxu1 }
0x1731   :  { %v2393_v60 = vadd.f32 %v2392_v58, %v2329_v55  ;;  %v3360_v61 = vpop.f32.mrb[63].mxu0  ;;  %v3367_v62 = vpop.f32.mrb[61].mxu1 }
0x1732   :  { %v2395_v63 = vpop.f32.mrb[62].mxu1 }
0x1733   :  { %v2398_v0 = vadd.f32 %v4107_v59, %v2393_v60  ;;  %v3368_v2 = vpop.f32.mrb[63].mxu1 }
0x1735   :  { %3613 = vtanh.f32 %v2398_v0  ;;  %v2975_v8 = vmul.f32 -1.442695, %v2398_v0 }
0x1738   :  { %v2537_v3 = vpop.f32.mrb[64].mxu1 }
0x1739   :  { %v2543_v4 = vadd.f32 %v2537_v3, %v3734_v11  ;;  %v3383_v39 = vpop.f32.mrb[65].mxu1 }
0x173a   :  { %v2540_v5 = vpop.f32.mrb[66].mxu1 }
0x173b   :  { %3615 = vtanh.f32 %v2543_v4  ;;  %v3384_v6 = vpop.f32.mrb[67].mxu1  ;;  %v2982_v9 = vmul.f32 -1.442695, %v2543_v4 }
0x173c   :  { %3617 = vpow2.f32 %v2975_v8 }
0x173d   :  { %3619 = vpow2.f32 %v2982_v9 }
0x173f   :  { %v3614_v7 = vpop.eup %3613 }
0x1740   :  { %2408 = vrot.lane.b32.xlu0 %v3614_v7, %s3666_s6 }
0x1745   :  { %v3616_v46 = vpop.eup %3615 }
0x1746   :  { %2556 = vrot.lane.b32.xlu1 %v3616_v46, %s3666_s6  ;;  %v3618_v10 = vpop.eup %3617  ;;  %v3492_v46 = vld [vmem:[%s4316_s3 + $0x8] sm:$0xff]  }
0x1747   :  { %v2402_v14 = vadd.f32 1.0, %v3618_v10  ;;  %v3620_v12 = vpop.eup %3619 }
0x1748   :  { %v2547_v15 = vadd.f32 1.0, %v3620_v12 }
0x1749   :  { %3621 = vrcp.f32 %v2402_v14 }
0x174a   :  { %3623 = vrcp.f32 %v2547_v15 }
0x1753   :  { %v3622_v11 = vpop.eup %3621 }
0x1754   :  { %v3624_v17 = vpop.eup %3623  ;;  %v2406_v25 = vmul.f32 %v3622_v11, %v4179_v29 }
0x1755   :  { %v2554_v13 = vmul.f32 %v3624_v17, %v2552_v18 }
0x17b2   :  { %v2409_v16 = vpop.permute.xlu0 %2408 }
0x17b3   :  { %v2411_v20 = vmul.f32 %v3622_v11, %v2409_v16 }
0x17b5   :  { %2413 = vrot.lane.b32.xlu0 %v2411_v20, %s3667_s7 }
0x17b8   :  { %v2557_v21 = vpop.permute.xlu1 %2556 }
0x17b9   :  { %v2559_v22 = vmul.f32 %v3624_v17, %v2557_v21 }
0x17bb   :  { %2561 = vrot.lane.b32.xlu1 %v2559_v22, %s3667_s7 }
0x1827   :  { %v2414_v27 = vpop.permute.xlu0 %2413 }
0x1828   :  { %v4247_v19 = vadd.f32 %v2414_v27, %v2406_v25 }
0x182a   :  { %3625 = vtanh.f32 %v4247_v19 }
0x182d   :  { %v2562_v30 = vpop.permute.xlu1 %2561 }
0x182e   :  { %v2564_v31 = vadd.f32 %v2562_v30, %v2554_v13 }
0x1830   :  { %3627 = vtanh.f32 %v2564_v31 }
0x1834   :  { %v3626_v29 = vpop.eup %3625 }
0x1835   :  { %2419 = vrot.lane.b32.xlu0 %v3626_v29, %s3666_s6 }
0x183a   :  { %v3628_v28 = vpop.eup %3627 }
0x183b   :  { %2567 = vrot.lane.b32.xlu1 %v3628_v28, %s3666_s6 }
0x18a7   :  { %v2420_v33 = vpop.permute.xlu0 %2419 }
0x18a8   :  { %v2422_v34 = vmul.f32 %v3622_v11, %v2420_v33 }
0x18aa   :  { %v2423_v35 = vpack.c.bf16 %v2422_v34, %v2422_v34 }
0x18ac   :  { %2429 = vrot.lane.b32.xlu0 %v2423_v35, %s3667_s7 }
0x18ad   :  { %v2568_v36 = vpop.permute.xlu1 %2567 }
0x18ae   :  { %v2570_v37 = vmul.f32 %v3624_v17, %v2568_v36 }
0x18b0   :  { %v2571_v38 = vpack.c.bf16 %v2570_v37, %v2570_v37 }
0x18b2   :  { %2633 = vrot.lane.b32.xlu1 %v2571_v38, %s3667_s7 }
0x191e   :  { %v2430_v41 = vpop.permute.xlu0 %2429 }
0x191f   :  { %3374 = vmatmul.mubr.msk.bf16.vlgmr.msra.gmra.mrb[64].mxu0 %vm59_vm0, %v2430_v41 }
0x1920   :  { %3386 = vmatpush3.bf16.msra.mxu0 %v3488_v40  ;;  %3389 = vmatprep.mubr.msk.bf16.mxu0 %vm3664_vm1, %v3663_v1 }
0x1921   :  { %3387 = vmatprep.subr.bf16.mxu0 %v3663_v1 }
0x1924   :  { %3388 = vmatpush3.bf16.msra.mxu0 %v3490_v42  ;;  %v2634_v43 = vpop.permute.xlu1 %2633 }
0x1925   :  { %3398 = vmatmul.mubr.msk.bf16.vlgmr.msra.gmra.mrb[68].mxu1 %vm59_vm0, %v2634_v43  ;;  %3401 = vmatprep.subr.bf16.mxu0 %v3663_v1 }
0x1927   :  { %3390 = vmatmul.mubr.msk.bf16.vlgmr.msra.gmra.mrb[68].mxu0 %vm59_vm0, %v2430_v41 }
0x1928   :  { %3405 = vmatprep.mubr.msk.bf16.mxu0 %vm3664_vm1, %v3663_v1 }
0x19f2   :  { %v2480_v44 = vpop.f32.mrb[64].mxu0 }
0x19f3   :  { %v2481_v45 = vadd.f32 %v4237_v50, %v2480_v44  ;;  %v3375_v47 = vpop.f32.mrb[65].mxu0 }
0x19f4   :  { %v2483_v48 = vpop.f32.mrb[66].mxu0 }
0x19f5   :  { %2486 = vst [vmem:[#allocation2 + $0xe] sm:$0x3] %v2481_v45  ;;  %v3376_v49 = vpop.f32.mrb[67].mxu0 }
0x19f8   :  { %v2684_v51 = vpop.f32.mrb[68].mxu1 }
0x19f9   :  { %v3399_v52 = vpop.f32.mrb[69].mxu1 }
0x19fa   :  { %v2622_v53 = vpop.f32.mrb[68].mxu0  ;;  %v2687_v54 = vpop.f32.mrb[70].mxu1 }
0x19fb   :  { %v2685_v55 = vadd.f32 %v2684_v51, %v2622_v53  ;;  %v3391_v56 = vpop.f32.mrb[69].mxu0  ;;  %v3400_v57 = vpop.f32.mrb[71].mxu1 }
0x19fc   :  { %v2625_v58 = vpop.f32.mrb[70].mxu0 }
0x19fd   :  { %v2690_v60 = vadd.f32 %v4107_v59, %v2685_v55  ;;  %v3392_v61 = vpop.f32.mrb[71].mxu0  ;;  %v3491_v59 = vld [vmem:[%s4316_s3] sm:$0xff]   ;;  %s3639_s3 = scalar_lea.vmem %s2785_s9, 384 }
0x19fe   :  { %3402 = vmatpush3.bf16.msra.mxu0 %v3491_v59  ;;  %p3640_p0 = scmp.ne.s32.totalorder %s2785_s9, %s3639_s3  ;;  %p3645_p2 = scmp.lt.s32.totalorder %s3639_s3, %s3639_s3 }
0x19ff   :  { %3629 = vtanh.f32 %v2690_v60  ;;  %v2997_v63 = vmul.f32 -1.442695, %v2690_v60  ;;  %3403 = vmatprep.subr.bf16.mxu0 %v3663_v1 }
0x1a00   :  { %p3646_p3 = por %p3645_p2, %p3644_p1 }
0x1a01   :  { %3631 = vpow2.f32 %v2997_v63 }
0x1a02   :  { %3404 = vmatpush3.bf16.msra.mxu0 %v3492_v46  ;;  %p3647_p4 = pnand %p3646_p3, %p3640_p0 }
0x1a09   :  { %v3630_v62 = vpop.eup %3629 }
0x1a0a   :  { %2700 = vrot.lane.b32.xlu0 %v3630_v62, %s3666_s6 }
0x1a0b   :  { %v3632_v0 = vpop.eup %3631 }
0x1a0c   :  { %v2694_v2 = vadd.f32 1.0, %v3632_v0 }
0x1a0e   :  { %3633 = vrcp.f32 %v2694_v2 }
0x1a18   :  { %v3634_v3 = vpop.eup %3633 }
0x1a19   :  { %v2698_v5 = vmul.f32 %v3634_v3, %v4247_v19 }
0x1a7c   :  { %v2701_v4 = vpop.permute.xlu0 %2700 }
0x1a7d   :  { %v2703_v39 = vmul.f32 %v3634_v3, %v2701_v4 }
0x1a7f   :  { %2705 = vrot.lane.b32.xlu1 %v2703_v39, %s3667_s7 }
0x1af1   :  { %v2706_v6 = vpop.permute.xlu1 %2705 }
0x1af2   :  { %v2708_v7 = vadd.f32 %v2706_v6, %v2698_v5 }
0x1af4   :  { %3635 = vtanh.f32 %v2708_v7 }
0x1afe   :  { %v3636_v8 = vpop.eup %3635 }
0x1aff   :  { %2711 = vrot.lane.b32.xlu0 %v3636_v8, %s3666_s6 }
0x1b71   :  { %v2712_v9 = vpop.permute.xlu0 %2711 }
0x1b72   :  { %v2714_v10 = vmul.f32 %v3634_v3, %v2712_v9 }
0x1b74   :  { %v2715_v14 = vpack.c.bf16 %v2714_v10, %v2714_v10 }
0x1b76   :  { %2721 = vrot.lane.b32.xlu1 %v2715_v14, %s3667_s7 }
0x1be8   :  { %v2722_v12 = vpop.permute.xlu1 %2721 }
0x1be9   :  { %3406 = vmatmul.mubr.msk.bf16.vlgmr.msra.gmra.mrb[72].mxu0 %vm59_vm0, %v2722_v12 }
0x1cbc   :  { %v2772_v15 = vpop.f32.mrb[72].mxu0 }
0x1cbd   :  { %v2773_v11 = vadd.f32 %v4237_v50, %v2772_v15  ;;  %v3407_v16 = vpop.f32.mrb[73].mxu0 }
0x1cbe   :  { %v2775_v1 = vpop.f32.mrb[74].mxu0 }
0x1cbf   :  { %2778 = vst [vmem:[#allocation2 + $0x10] sm:$0x3] %v2773_v11  ;;  %v3408_v20 = vpop.f32.mrb[75].mxu0 }
0x1cc0   :  { %3650 = shalt.err (!%p3647_p4)
}
0x1cc1   :  { %s3651_s2 = scalar_lea.hbm %s4318_s5, 384 }
0x1cc2   :  { %p3652_p5 = scmp.ne.s32.totalorder %s4318_s5, %s3651_s2  ;;  %p3655_p6 = scmp.lt.u32.totalorder %s3651_s2, %s4318_s5 }
0x1cc4   :  { %p3657_p7 = pnand %p3655_p6, %p3652_p5 }
0x1cc6   :  { %3660 = shalt.err (!%p3657_p7)
}
0x1cc7   :  { %s3669_s14 = smov 128   ;;  %s3670_s15 = smov 8  }
0x1cc8   :  { %2790 = dma.vmem_to_hbm [thread:$0]  %s2785_s9, 384, %s4318_s5, [#allocation3], %s3669_s14, %s3669_s14, %s3670_s15  }
0x1cc9   :  { %3661 = dma.done.wait [#allocation3], 384  }
0x1cca   :  { %3662 = vsyncadd [#allocation3], 4294966912 }
0x1ccb   :  { %2794 = vsyncpa [#allocation3], 1 }

</bundles_post_ra>
